<compile_context>
chip_gen: v5e
topology: v5e:2x2
jax: 0.10.0
libtpu: 0.0.40
codegen_flags: <defaults>
</compile_context>

<pallas_src>
import math

import jax
import jax.numpy as jnp
from jax.experimental import pallas as pl
from jax.experimental.pallas import tpu as pltpu

EPS = 1e-5


def _largest_divisor_leq(n, bound):
    for d in range(min(n, max(bound, 1)), 0, -1):
        if n % d == 0:
            return d
    return n


def _pick_row_tile(total, target):
    """Largest divisor of `total` that is a multiple of 8 and <= target, else `total`."""
    best = None
    d = 8
    limit = min(total, target)
    while d <= limit:
        if total % d == 0:
            best = d
        d += 8
    return best if best is not None else total


def _vmem_limit_bytes():
    try:
        info = pltpu.get_tpu_info()
        cap = getattr(info, "vmem_capacity_bytes", None)
    except Exception:
        cap = None
    if not cap:
        return 48 * 1024 * 1024          # safe everywhere (<= v7x's 64 MiB)
    # ~75% of physical VMEM: ~96 MiB on v5e/v6e (128 MiB), ~48 MiB on v7x (64 MiB).
    return int(min(cap * 3 // 4, 100 * 1024 * 1024))


def _relu_conv_stats_kernel(x_ref, top_ref, bot_ref, w_ref, conv_ref, sum_ref, sq_ref):
    """Fused input-ReLU + 3x3 conv (stride 1, pad 1) + per-tile channel stats.

    x_ref:    (1, th, W, Cin)   unpadded NHWC rows of this H tile
    top_ref:  (1, 1,  W, Cin)   row above the tile (index clamped at the edge)
    bot_ref:  (1, 1,  W, Cin)   row below the tile (index clamped at the edge)
    w_ref:    (3, 3*Cin, Cout)  weights with kw folded into the contraction (bf16)
    conv_ref: (1, th, W, Cout)  conv output tile (bf16)
    sum_ref:  (1, 1, Cout)      per-tile partial sum(conv)
    sq_ref:   (1, 1, Cout)      per-tile partial sum(conv**2)
    """
    h = pl.program_id(1)
    nh = pl.num_programs(1)
    _, th, W, Cout = conv_ref.shape
    Cin = x_ref.shape[3]

    # Input ReLU; halo rows zero-masked at the first/last tile which, together
    # with the zero columns below, implements padding=1 (relu(0) == 0).
    x_mid = jnp.maximum(x_ref[0], 0.0)                                   # (th, W, Cin)
    top = jnp.maximum(top_ref[0], 0.0) * (h > 0).astype(jnp.float32)     # (1, W, Cin)
    bot = jnp.maximum(bot_ref[0], 0.0) * (h < nh - 1).astype(jnp.float32)
    xh = jnp.concatenate([top, x_mid, bot], axis=0)                      # (th+2, W, Cin)
    zcol = jnp.zeros((th + 2, 1, Cin), dtype=xh.dtype)
    xp = jnp.concatenate([zcol, xh, zcol], axis=1)                       # (th+2, W+2, Cin)

    # 3 MXU matmuls with K = 3*Cin, bf16 operands, f32 accumulation.
    acc = jnp.zeros((th * W, Cout), jnp.float32)
    for kh in range(3):                                                  # static unroll
        rows = xp[kh:kh + th]                                            # (th, W+2, Cin)
        op = jnp.concatenate(
            [rows[:, 0:W], rows[:, 1:W + 1], rows[:, 2:W + 2]], axis=-1)
        op = op.reshape(th * W, 3 * Cin).astype(jnp.bfloat16)
        acc = acc + jnp.dot(op, w_ref[kh], preferred_element_type=jnp.float32)

    conv_ref[...] = acc.reshape(1, th, W, Cout).astype(conv_ref.dtype)
    # Per-tile partials written to their own slot (no resident RMW accumulator),
    # summed in the JAX finalize -> both grid axes stay "parallel".
    sum_ref[...] = jnp.sum(acc, axis=0).reshape(1, 1, Cout)
    sq_ref[...] = jnp.sum(acc * acc, axis=0).reshape(1, 1, Cout)


def _bn_relu_kernel(y_ref, scale_ref, shift_ref, o_ref):
    """Folded BN affine + final ReLU on a lane-dense (rows, W*Cout) tile."""
    y = y_ref[...].astype(jnp.float32)
    o_ref[...] = jnp.maximum(y * scale_ref[...] + shift_ref[...], 0.0).astype(o_ref.dtype)


def relu_conv_forward(x_nchw, conv_w, gamma, beta, *, th_h=None, tr_rows=None):
    """Forward of Relu_Conv: relu -> conv3x3(p=1, no bias) -> BN(train) -> relu.

    x_nchw: (N, Cin, H, W) f32,  conv_w: (Cout, Cin, 3, 3) f32 (OIHW),
    gamma, beta: (Cout,) f32.  Returns (N, Cout, H, W) f32.
    """
    N, Cin, H, W = x_nchw.shape
    Cout = conv_w.shape[0]

    # NCHW -> NHWC so the MXU contracts over Cin (channels on lanes).
    # TODO(synk): fold this transpose into pass 1 (in-kernel CHW->HWC relayout)
    # to drop one more HBM pass over the input.
    x_nhwc = jnp.transpose(x_nchw, (0, 2, 3, 1)).astype(jnp.float32)

    # OIHW -> (kh, kw*Cin, Cout) with kw folded into the contraction dim; bf16.
    # TODO(synk): for large Cin*Cout, single-buffer the weights via a scratch DMA
    # (or a Cout grid axis) instead of the double-buffered constant BlockSpec.
    w3 = (jnp.transpose(conv_w, (2, 3, 1, 0))
          .reshape(3, 3 * Cin, Cout).astype(jnp.bfloat16))

    if th_h is None:
        # Keep <= ~512 matmul rows per tile: bounds the f32 accumulator / operand
        # vreg pressure and keeps per-tile VMEM small enough for v7x's 64 MiB.
        th_h = _largest_divisor_leq(H, max(1, 512 // max(W, 1)))
    n_th = H // th_h
    vmem_limit = _vmem_limit_bytes()

    # ---- Pass 1: relu + conv3x3 + per-tile channel stat partials -----------
    conv_out, sum_p, sq_p = pl.pallas_call(
        _relu_conv_stats_kernel,
        out_shape=(
            jax.ShapeDtypeStruct((N, H, W, Cout), jnp.bfloat16),
            jax.ShapeDtypeStruct((N * n_th, 1, Cout), jnp.float32),
            jax.ShapeDtypeStruct((N * n_th, 1, Cout), jnp.float32),
        ),
        grid=(N, n_th),
        in_specs=[
            pl.BlockSpec((1, th_h, W, Cin), lambda n, h: (n, h, 0, 0)),
            pl.BlockSpec((1, 1, W, Cin),
                         lambda n, h: (n, jnp.maximum(h * th_h - 1, 0), 0, 0)),
            pl.BlockSpec((1, 1, W, Cin),
                         lambda n, h: (n, jnp.minimum((h + 1) * th_h, H - 1), 0, 0)),
            pl.BlockSpec((3, 3 * Cin, Cout), lambda n, h: (0, 0, 0)),
        ],
        out_specs=(
            pl.BlockSpec((1, th_h, W, Cout), lambda n, h: (n, h, 0, 0)),
            pl.BlockSpec((1, 1, Cout), lambda n, h: (n * n_th + h, 0, 0)),
            pl.BlockSpec((1, 1, Cout), lambda n, h: (n * n_th + h, 0, 0)),
        ),
        compiler_params=pltpu.CompilerParams(
            dimension_semantics=("parallel", "parallel"),
            vmem_limit_bytes=vmem_limit),
    )(x_nhwc, x_nhwc, x_nhwc, w3)

    # ---- BN statistics finalize (tiny (Cout,) math in plain JAX) -----------
    # NOTE: single-pass E[x^2]-E[x]^2 in f32; fine at these scales, switch to
    # shifted/two-pass sums if very large N*H*W ever pushes past tolerance.
    count = jnp.float32(N * H * W)
    s = jnp.sum(sum_p.reshape(-1, Cout), axis=0)
    sq = jnp.sum(sq_p.reshape(-1, Cout), axis=0)
    mean = s / count
    var = jnp.maximum(sq / count - mean * mean, 0.0)       # biased batch variance
    inv_std = jax.lax.rsqrt(var + EPS)
    scale_c = gamma.astype(jnp.float32) * inv_std
    shift_c = beta.astype(jnp.float32) - mean * scale_c
    # Pre-tile to (1, W*Cout) so pass 2's stores stay lane-dense when Cout < 128.
    scale_wc = jnp.tile(scale_c, (W,)).reshape(1, W * Cout)
    shift_wc = jnp.tile(shift_c, (W,)).reshape(1, W * Cout)

    # ---- Pass 2: folded BN + final ReLU on a lane-dense flat view ----------
    conv_flat = conv_out.reshape(N * H, W * Cout)          # free metadata reshape
    if tr_rows is None:
        target = max(8, (4 * 1024 * 1024) // max(1, W * Cout * 4))  # ~4 MiB f32 blocks
        tr_rows = _pick_row_tile(N * H, target)
    out_flat = pl.pallas_call(
        _bn_relu_kernel,
        out_shape=jax.ShapeDtypeStruct((N * H, W * Cout), jnp.float32),
        grid=(N * H // tr_rows,),
        in_specs=[
            pl.BlockSpec((tr_rows, W * Cout), lambda r: (r, 0)),
            pl.BlockSpec((1, W * Cout), lambda r: (0, 0)),
            pl.BlockSpec((1, W * Cout), lambda r: (0, 0)),
        ],
        out_specs=pl.BlockSpec((tr_rows, W * Cout), lambda r: (r, 0)),
        compiler_params=pltpu.CompilerParams(
            dimension_semantics=("parallel",),
            vmem_limit_bytes=vmem_limit),
    )(conv_flat, scale_wc, shift_wc)

    out_nhwc = out_flat.reshape(N, H, W, Cout)
    # TODO(synk): fold this NHWC->NCHW transpose into pass 2 (write (Cout, th, W)
    # blocks via an in-kernel XLU relayout) to drop one HBM pass over the output.
    return jnp.transpose(out_nhwc, (0, 3, 1, 2)).astype(x_nchw.dtype)


def _reference(x, w, gamma, beta):
    """Pure-JAX f32 reference: relu -> conv3x3 -> train-mode BN -> relu (NCHW)."""
    xr = jnp.maximum(x, 0.0)
    y = jax.lax.conv_general_dilated(
        xr, w, window_strides=(1, 1), padding=((1, 1), (1, 1)),
        dimension_numbers=("NCHW", "OIHW", "NCHW"),
        precision=jax.lax.Precision.HIGHEST)
    mean = jnp.mean(y, axis=(0, 2, 3), keepdims=True)
    var = jnp.mean((y - mean) ** 2, axis=(0, 2, 3), keepdims=True)
    yhat = (y - mean) * jax.lax.rsqrt(var + EPS)
    out = yhat * gamma.reshape(1, -1, 1, 1) + beta.reshape(1, -1, 1, 1)
    return jnp.maximum(out, 0.0)


if __name__ == "__main__":
    key = jax.random.PRNGKey(0)
    kx, kw, kg, kb = jax.random.split(key, 4)

    N, Cin, Cout, H, W = 2, 4, 4, 16, 16
    x = jax.random.normal(kx, (N, Cin, H, W), dtype=jnp.float32)
    w = jax.random.normal(kw, (Cout, Cin, 3, 3), dtype=jnp.float32)
    w = w * (1.0 / math.sqrt(Cin * 9))                     # kaiming-like scale
    gamma = 1.0 + 0.1 * jax.random.normal(kg, (Cout,), dtype=jnp.float32)
    beta = 0.1 * jax.random.normal(kb, (Cout,), dtype=jnp.float32)

    ref = _reference(x, w, gamma, beta)

    # bf16 MXU operands / bf16 conv intermediate -> compare with bf16-level tolerance.
    TOL = 3e-2

    # Default (auto) tiling.
    out = jax.block_until_ready(relu_conv_forward(x, w, gamma, beta))
    assert out.shape == (N, Cout, H, W)
    err = float(jnp.max(jnp.abs(out - ref)))
    assert jnp.allclose(out, ref, atol=TOL, rtol=TOL), f"mismatch (max abs err={err})"

    # Forced multi-tile path: exercises the in-kernel H-halo assembly and the
    # pass-2 row tiling on the same small inputs.
    out2 = jax.block_until_ready(
        relu_conv_forward(x, w, gamma, beta, th_h=4, tr_rows=8))
    err2 = float(jnp.max(jnp.abs(out2 - ref)))
    assert jnp.allclose(out2, ref, atol=TOL, rtol=TOL), f"tiled mismatch (max abs err={err2})"

    print("KERNEL_OK")
</pallas_src>

<mosaic_0001>
module attributes {stable_mosaic.version = 11 : i64} {
  func.func @_relu_conv_stats_kernel(%arg0: i32, %arg1: i32, %arg2: memref<1x16x16x4xf32, #tpu.memory_space<vmem>>, %arg3: memref<1x1x16x4xf32, #tpu.memory_space<vmem>>, %arg4: memref<1x1x16x4xf32, #tpu.memory_space<vmem>>, %arg5: memref<3x12x4xbf16, #tpu.memory_space<vmem>>, %arg6: memref<1x16x16x4xbf16, #tpu.memory_space<vmem>>, %arg7: memref<1x1x4xf32, #tpu.memory_space<vmem>>, %arg8: memref<1x1x4xf32, #tpu.memory_space<vmem>>) attributes {dimension_semantics = [#tpu.dimension_semantics<parallel>, #tpu.dimension_semantics<parallel>], iteration_bounds = array<i64: 2, 1>, scalar_prefetch = 0 : i64, scratch_operands = 0 : i64, tpu.core_type = #tpu.core_type<tc>, window_params = [{transform_indices = @transform_0, window_bounds = array<i64: 1, 16, 16, 4>}, {transform_indices = @transform_1, window_bounds = array<i64: 1, 1, 16, 4>}, {transform_indices = @transform_2, window_bounds = array<i64: 1, 1, 16, 4>}, {pipeline_mode = #tpu.pipeline_mode<synchronous>, transform_indices = @transform_3, window_bounds = array<i64: 3, 12, 4>}, {transform_indices = @transform_4, window_bounds = array<i64: 1, 16, 16, 4>}, {transform_indices = @transform_5, window_bounds = array<i64: 1, 1, 4>}, {transform_indices = @transform_6, window_bounds = array<i64: 1, 1, 4>}]} {
    %c0 = arith.constant 0 : index
    %c0_0 = arith.constant 0 : index
    %c0_1 = arith.constant 0 : index
    %c0_2 = arith.constant 0 : index
    %0 = vector.load %arg2[%c0, %c0_0, %c0_1, %c0_2] : memref<1x16x16x4xf32, #tpu.memory_space<vmem>>, vector<1x16x16x4xf32>
    %1 = vector.shape_cast %0 : vector<1x16x16x4xf32> to vector<16x16x4xf32>
    %cst = arith.constant 0.000000e+00 : f32
    %2 = vector.broadcast %cst : f32 to vector<16x16x4xf32>
    %3 = arith.maximumf %1, %2 : vector<16x16x4xf32>
    %c0_3 = arith.constant 0 : index
    %c0_4 = arith.constant 0 : index
    %c0_5 = arith.constant 0 : index
    %c0_6 = arith.constant 0 : index
    %4 = vector.load %arg3[%c0_3, %c0_4, %c0_5, %c0_6] : memref<1x1x16x4xf32, #tpu.memory_space<vmem>>, vector<1x1x16x4xf32>
    %5 = vector.shape_cast %4 : vector<1x1x16x4xf32> to vector<1x16x4xf32>
    %cst_7 = arith.constant 0.000000e+00 : f32
    %6 = vector.broadcast %cst_7 : f32 to vector<1x16x4xf32>
    %7 = arith.maximumf %5, %6 : vector<1x16x4xf32>
    %c0_i32 = arith.constant 0 : i32
    %8 = arith.cmpi sgt, %arg1, %c0_i32 : i32
    %9 = arith.extui %8 : i1 to i32
    %10 = arith.sitofp %9 : i32 to f32
    %11 = vector.broadcast %10 : f32 to vector<1x16x4xf32>
    %12 = arith.mulf %7, %11 : vector<1x16x4xf32>
    %c0_8 = arith.constant 0 : index
    %c0_9 = arith.constant 0 : index
    %c0_10 = arith.constant 0 : index
    %c0_11 = arith.constant 0 : index
    %13 = vector.load %arg4[%c0_8, %c0_9, %c0_10, %c0_11] : memref<1x1x16x4xf32, #tpu.memory_space<vmem>>, vector<1x1x16x4xf32>
    %14 = vector.shape_cast %13 : vector<1x1x16x4xf32> to vector<1x16x4xf32>
    %cst_12 = arith.constant 0.000000e+00 : f32
    %15 = vector.broadcast %cst_12 : f32 to vector<1x16x4xf32>
    %16 = arith.maximumf %14, %15 : vector<1x16x4xf32>
    %c0_i32_13 = arith.constant 0 : i32
    %17 = arith.cmpi slt, %arg1, %c0_i32_13 : i32
    %18 = arith.extui %17 : i1 to i32
    %19 = arith.sitofp %18 : i32 to f32
    %20 = vector.broadcast %19 : f32 to vector<1x16x4xf32>
    %21 = arith.mulf %16, %20 : vector<1x16x4xf32>
    %22 = tpu.concatenate %12, %3, %21 in 0 : vector<1x16x4xf32>, vector<16x16x4xf32>, vector<1x16x4xf32> -> vector<18x16x4xf32>
    %cst_14 = arith.constant 0.000000e+00 : f32
    %23 = vector.broadcast %cst_14 : f32 to vector<18x1x4xf32>
    %24 = tpu.concatenate %23, %22, %23 in 1 : vector<18x1x4xf32>, vector<18x16x4xf32>, vector<18x1x4xf32> -> vector<18x18x4xf32>
    %cst_15 = arith.constant 0.000000e+00 : f32
    %25 = vector.broadcast %cst_15 : f32 to vector<256x4xf32>
    %26 = vector.extract_strided_slice %24 {offsets = [0, 0, 0], sizes = [16, 18, 4], strides = [1, 1, 1]} : vector<18x18x4xf32> to vector<16x18x4xf32>
    %27 = vector.extract_strided_slice %26 {offsets = [0, 0, 0], sizes = [16, 16, 4], strides = [1, 1, 1]} : vector<16x18x4xf32> to vector<16x16x4xf32>
    %28 = vector.extract_strided_slice %26 {offsets = [0, 1, 0], sizes = [16, 16, 4], strides = [1, 1, 1]} : vector<16x18x4xf32> to vector<16x16x4xf32>
    %29 = vector.extract_strided_slice %26 {offsets = [0, 2, 0], sizes = [16, 16, 4], strides = [1, 1, 1]} : vector<16x18x4xf32> to vector<16x16x4xf32>
    %30 = tpu.concatenate %27, %28, %29 in 2 : vector<16x16x4xf32>, vector<16x16x4xf32>, vector<16x16x4xf32> -> vector<16x16x12xf32>
    %31 = vector.shape_cast %30 : vector<16x16x12xf32> to vector<256x12xf32>
    %32 = arith.truncf %31 : vector<256x12xf32> to vector<256x12xbf16>
    %c0_16 = arith.constant 0 : index
    %c0_17 = arith.constant 0 : index
    %c0_18 = arith.constant 0 : index
    %33 = vector.load %arg5[%c0_16, %c0_17, %c0_18] : memref<3x12x4xbf16, #tpu.memory_space<vmem>>, vector<1x12x4xbf16>
    %34 = vector.shape_cast %33 : vector<1x12x4xbf16> to vector<12x4xbf16>
    %cst_19 = arith.constant dense<0.000000e+00> : vector<256x4xf32>
    %35 = tpu.matmul %32, %34, %cst_19 {dimension_numbers = #tpu.dot_dimension_numbers<[1], [0], [0], [1], [0, 0, 1, 1], [], []>} : vector<256x12xbf16>, vector<12x4xbf16>, vector<256x4xf32> -> vector<256x4xf32>
    %36 = arith.addf %25, %35 : vector<256x4xf32>
    %37 = vector.extract_strided_slice %24 {offsets = [1, 0, 0], sizes = [16, 18, 4], strides = [1, 1, 1]} : vector<18x18x4xf32> to vector<16x18x4xf32>
    %38 = vector.extract_strided_slice %37 {offsets = [0, 0, 0], sizes = [16, 16, 4], strides = [1, 1, 1]} : vector<16x18x4xf32> to vector<16x16x4xf32>
    %39 = vector.extract_strided_slice %37 {offsets = [0, 1, 0], sizes = [16, 16, 4], strides = [1, 1, 1]} : vector<16x18x4xf32> to vector<16x16x4xf32>
    %40 = vector.extract_strided_slice %37 {offsets = [0, 2, 0], sizes = [16, 16, 4], strides = [1, 1, 1]} : vector<16x18x4xf32> to vector<16x16x4xf32>
    %41 = tpu.concatenate %38, %39, %40 in 2 : vector<16x16x4xf32>, vector<16x16x4xf32>, vector<16x16x4xf32> -> vector<16x16x12xf32>
    %42 = vector.shape_cast %41 : vector<16x16x12xf32> to vector<256x12xf32>
    %43 = arith.truncf %42 : vector<256x12xf32> to vector<256x12xbf16>
    %c1 = arith.constant 1 : index
    %c0_20 = arith.constant 0 : index
    %c0_21 = arith.constant 0 : index
    %44 = vector.load %arg5[%c1, %c0_20, %c0_21] : memref<3x12x4xbf16, #tpu.memory_space<vmem>>, vector<1x12x4xbf16>
    %45 = vector.shape_cast %44 : vector<1x12x4xbf16> to vector<12x4xbf16>
    %cst_22 = arith.constant dense<0.000000e+00> : vector<256x4xf32>
    %46 = tpu.matmul %43, %45, %cst_22 {dimension_numbers = #tpu.dot_dimension_numbers<[1], [0], [0], [1], [0, 0, 1, 1], [], []>} : vector<256x12xbf16>, vector<12x4xbf16>, vector<256x4xf32> -> vector<256x4xf32>
    %47 = arith.addf %36, %46 : vector<256x4xf32>
    %48 = vector.extract_strided_slice %24 {offsets = [2, 0, 0], sizes = [16, 18, 4], strides = [1, 1, 1]} : vector<18x18x4xf32> to vector<16x18x4xf32>
    %49 = vector.extract_strided_slice %48 {offsets = [0, 0, 0], sizes = [16, 16, 4], strides = [1, 1, 1]} : vector<16x18x4xf32> to vector<16x16x4xf32>
    %50 = vector.extract_strided_slice %48 {offsets = [0, 1, 0], sizes = [16, 16, 4], strides = [1, 1, 1]} : vector<16x18x4xf32> to vector<16x16x4xf32>
    %51 = vector.extract_strided_slice %48 {offsets = [0, 2, 0], sizes = [16, 16, 4], strides = [1, 1, 1]} : vector<16x18x4xf32> to vector<16x16x4xf32>
    %52 = tpu.concatenate %49, %50, %51 in 2 : vector<16x16x4xf32>, vector<16x16x4xf32>, vector<16x16x4xf32> -> vector<16x16x12xf32>
    %53 = vector.shape_cast %52 : vector<16x16x12xf32> to vector<256x12xf32>
    %54 = arith.truncf %53 : vector<256x12xf32> to vector<256x12xbf16>
    %c2 = arith.constant 2 : index
    %c0_23 = arith.constant 0 : index
    %c0_24 = arith.constant 0 : index
    %55 = vector.load %arg5[%c2, %c0_23, %c0_24] : memref<3x12x4xbf16, #tpu.memory_space<vmem>>, vector<1x12x4xbf16>
    %56 = vector.shape_cast %55 : vector<1x12x4xbf16> to vector<12x4xbf16>
    %cst_25 = arith.constant dense<0.000000e+00> : vector<256x4xf32>
    %57 = tpu.matmul %54, %56, %cst_25 {dimension_numbers = #tpu.dot_dimension_numbers<[1], [0], [0], [1], [0, 0, 1, 1], [], []>} : vector<256x12xbf16>, vector<12x4xbf16>, vector<256x4xf32> -> vector<256x4xf32>
    %58 = arith.addf %47, %57 : vector<256x4xf32>
    %59 = vector.shape_cast %58 : vector<256x4xf32> to vector<1x16x16x4xf32>
    %60 = arith.truncf %59 : vector<1x16x16x4xf32> to vector<1x16x16x4xbf16>
    %c0_26 = arith.constant 0 : index
    %c0_27 = arith.constant 0 : index
    %c0_28 = arith.constant 0 : index
    %c0_29 = arith.constant 0 : index
    %61 = vector.load %arg6[%c0_26, %c0_27, %c0_28, %c0_29] : memref<1x16x16x4xbf16, #tpu.memory_space<vmem>>, vector<1x16x16x4xbf16>
    tpu.vector_store %arg6[%c0_26, %c0_27, %c0_28, %c0_29], %60 {strides = array<i32>} : memref<1x16x16x4xbf16, #tpu.memory_space<vmem>>, vector<1x16x16x4xbf16>,
    %cst_30 = arith.constant dense<0.000000e+00> : vector<4xf32>
    %62 = vector.multi_reduction <add>, %58, %cst_30 [0] : vector<256x4xf32> to vector<4xf32>
    %63 = vector.shape_cast %62 : vector<4xf32> to vector<1x1x4xf32>
    %c0_31 = arith.constant 0 : index
    %c0_32 = arith.constant 0 : index
    %c0_33 = arith.constant 0 : index
    %64 = vector.load %arg7[%c0_31, %c0_32, %c0_33] : memref<1x1x4xf32, #tpu.memory_space<vmem>>, vector<1x1x4xf32>
    tpu.vector_store %arg7[%c0_31, %c0_32, %c0_33], %63 {strides = array<i32>} : memref<1x1x4xf32, #tpu.memory_space<vmem>>, vector<1x1x4xf32>,
    %65 = arith.mulf %58, %58 : vector<256x4xf32>
    %cst_34 = arith.constant dense<0.000000e+00> : vector<4xf32>
    %66 = vector.multi_reduction <add>, %65, %cst_34 [0] : vector<256x4xf32> to vector<4xf32>
    %67 = vector.shape_cast %66 : vector<4xf32> to vector<1x1x4xf32>
    %c0_35 = arith.constant 0 : index
    %c0_36 = arith.constant 0 : index
    %c0_37 = arith.constant 0 : index
    %68 = vector.load %arg8[%c0_35, %c0_36, %c0_37] : memref<1x1x4xf32, #tpu.memory_space<vmem>>, vector<1x1x4xf32>
    tpu.vector_store %arg8[%c0_35, %c0_36, %c0_37], %67 {strides = array<i32>} : memref<1x1x4xf32, #tpu.memory_space<vmem>>, vector<1x1x4xf32>,
    return
  }
  func.func @transform_0(%arg0: i32, %arg1: i32) -> (i32, i32, i32, i32) {
    %c0_i32 = arith.constant 0 : i32
    %c0_i32_0 = arith.constant 0 : i32
    %c0_i32_1 = arith.constant 0 : i32
    return %arg0, %arg1, %c0_i32, %c0_i32_0 : i32, i32, i32, i32
  }
  func.func @transform_1(%arg0: i32, %arg1: i32) -> (i32, i32, i32, i32) {
    %c16_i32 = arith.constant 16 : i32
    %0 = arith.muli %arg1, %c16_i32 : i32
    %c1_i32 = arith.constant 1 : i32
    %1 = arith.subi %0, %c1_i32 : i32
    %c0_i32 = arith.constant 0 : i32
    %2 = arith.maxsi %1, %c0_i32 : i32
    %c0_i32_0 = arith.constant 0 : i32
    %c0_i32_1 = arith.constant 0 : i32
    %c0_i32_2 = arith.constant 0 : i32
    return %arg0, %2, %c0_i32_0, %c0_i32_1 : i32, i32, i32, i32
  }
  func.func @transform_2(%arg0: i32, %arg1: i32) -> (i32, i32, i32, i32) {
    %c1_i32 = arith.constant 1 : i32
    %0 = arith.addi %arg1, %c1_i32 : i32
    %c16_i32 = arith.constant 16 : i32
    %1 = arith.muli %0, %c16_i32 : i32
    %c15_i32 = arith.constant 15 : i32
    %2 = arith.minsi %1, %c15_i32 : i32
    %c0_i32 = arith.constant 0 : i32
    %c0_i32_0 = arith.constant 0 : i32
    %c0_i32_1 = arith.constant 0 : i32
    return %arg0, %2, %c0_i32, %c0_i32_0 : i32, i32, i32, i32
  }
  func.func @transform_3(%arg0: i32, %arg1: i32) -> (i32, i32, i32) {
    %c0_i32 = arith.constant 0 : i32
    %c0_i32_0 = arith.constant 0 : i32
    %c0_i32_1 = arith.constant 0 : i32
    %c0_i32_2 = arith.constant 0 : i32
    return %c0_i32, %c0_i32_0, %c0_i32_1 : i32, i32, i32
  }
  func.func @transform_4(%arg0: i32, %arg1: i32) -> (i32, i32, i32, i32) {
    %c0_i32 = arith.constant 0 : i32
    %c0_i32_0 = arith.constant 0 : i32
    %c0_i32_1 = arith.constant 0 : i32
    return %arg0, %arg1, %c0_i32, %c0_i32_0 : i32, i32, i32, i32
  }
  func.func @transform_5(%arg0: i32, %arg1: i32) -> (i32, i32, i32) {
    %c1_i32 = arith.constant 1 : i32
    %0 = arith.muli %arg0, %c1_i32 : i32
    %1 = arith.addi %0, %arg1 : i32
    %c0_i32 = arith.constant 0 : i32
    %c0_i32_0 = arith.constant 0 : i32
    %c0_i32_1 = arith.constant 0 : i32
    return %1, %c0_i32, %c0_i32_0 : i32, i32, i32
  }
  func.func @transform_6(%arg0: i32, %arg1: i32) -> (i32, i32, i32) {
    %c1_i32 = arith.constant 1 : i32
    %0 = arith.muli %arg0, %c1_i32 : i32
    %1 = arith.addi %0, %arg1 : i32
    %c0_i32 = arith.constant 0 : i32
    %c0_i32_0 = arith.constant 0 : i32
    %c0_i32_1 = arith.constant 0 : i32
    return %1, %c0_i32, %c0_i32_0 : i32, i32, i32
  }
}

</mosaic_0001>

<bundles_post_ra>
// kernel: tpu_custom_call.1
= control target key start
LH: loop header
LB: loop body
LE: loop exit
PB: predicated region body
PF: predicated region fallthrough
CT: control target
= control target key end

     0   :  { %12 = vsyncpa [#allocation3], 0  ;;  %s3591_s0 = inlined_call_operand.vmem [shape: f32[2,16,16,4], index: 0, kind: input, shape index: {}]   ;;  %s3592_s1 = inlined_call_operand.vmem [shape: f32[2,16,16,4], index: 1, kind: input, shape index: {}]   ;;  %s3593_s2 = inlined_call_operand.vmem [shape: f32[2,16,16,4], index: 2, kind: input, shape index: {}]   ;;  %s3594_s3 = inlined_call_operand.vmem [shape: bf16[3,12,4], index: 3, kind: input, shape index: {}]   ;;  %s3595_s4 = inlined_call_operand.vmem [shape: bf16[2,16,16,4], index: 4, kind: output, shape index: {0}]   ;;  %s3596_s5 = inlined_call_operand.hbm [shape: f32[2,1,4], index: 5, kind: output, shape index: {1}]   ;;  %s3597_s6 = inlined_call_operand.hbm [shape: f32[2,1,4], index: 6, kind: output, shape index: {2}]  }
   0x1   :  { %14 = vsyncpa [#allocation3 + $0x1], 0 }
   0x2   :  { %15 = vsyncpa [#allocation5], 0 }
   0x3   :  { %17 = vsyncpa [#allocation5 + $0x1], 0  ;;  %s2575_s21 = smov 0   ;;  %s2577_s22 = smov 0  }
   0x4   :  { %s2579_s23 = smov 0   ;;  %s2581_s24 = smov 0  }
   0x5   :  { %s2583_s25 = smov 0   ;;  %s2585_s26 = smov 0  }
   0x6 LB: > { %s2093_s27 = sadd.s32 4294967295, %s2536_s26   ;;  %s2094_s28 = sadd.s32 4294967294, %s2536_s26   ;;  %s2536_s26 = sphi %s2585_s26, %s23_s26   ;;  %s2532_s25 = sphi %s2583_s25, %s3604_s25   ;;  %s2528_s24 = sphi %s2581_s24, %s3603_s24   ;;  %s2524_s23 = sphi %s2579_s23, %s3602_s23   ;;  %s2520_s22 = sphi %s2577_s22, %s3601_s22   ;;  %s2516_s21 = sphi %s2575_s21, %s3600_s21  }
   0x7   : > { %s35_s29 = sadd.s32 1, %s2532_s25  ;;  %s193_s30 = sadd.s32 1, %s2524_s23 }
   0x8   : > { %p37_p0 = scmp.ge.s32.totalorder %s35_s29, 2  ;;  %p203_p1 = scmp.ne.s32.totalorder %s2524_s23, %s2520_s22 }
   0x9   : > { %p204_p2 = scmp.eq.s32.totalorder %s2093_s27, 1  ;;  %p209_p3 = scmp.ne.s32.totalorder %s2520_s22, %s2516_s21 }
   0xa   : > { %s3606_s29 = smov (%p37_p0, %s35_s29), 0  ;;  %p210_p5 = scmp.eq.s32.totalorder %s2094_s28, 1 }
   0xb   : > { %p2615_p4 = por %p204_p2, %p203_p1  ;;  %s190_s8 = ssub.s32 %s2532_s25, %s3606_s29 }
   0xc   : > { %p2097_p6 = scmp.ge.s32.totalorder %s2536_s26, 1  ;;  %p191_p7 = scmp.eq.s32.totalorder %s190_s8, 0 }
   0xd   : > { %p2622_p8 = por %p210_p5, %p209_p3  ;;  %p313_p9 = scmp.lt.s32.totalorder %s2536_s26, 3 }
   0xe   : > { %s2628_s10 = scalar_select %p191_p7, %s2524_s23, %s193_s30  }
   0xf   : > { %p314_p10 = pnand %p2097_p6, %p313_p9 }
  0x10   : > { %p388_p11 = scmp.lt.s32.totalorder (!%p314_p10), %s2528_s24, 1  ;;  %s2538_s19 = smov (!%p314_p10), 4  }
  0x11   : > { %317 = sbr.rel (%p314_p10) target bundleno = 530 (0x212), region = 36  ;;  %s2539_s20 = smov (!%p314_p10), 8  }
  0x12   : > { %s1889_s27 = scalar_lea.hbm (!%p314_p10), %s3596_s5, %s2528_s24  ;;  %s2446_s28 = scalar_lea.hbm (!%p314_p10), %s3596_s5, 2 }
  0x16   : > { %s2632_s11 = scalar_select %p388_p11, %s2528_s24, 1  ;;  %vm566_vm0 = vcmask 1040384   ;;  %vm743_vm1 = vcmask 1046528   ;;  %vm920_vm2 = vcmask 1045504   ;;  %vm1097_vm3 = vcmask 31744  }
  0x17   : > { %vm1130_vm4 = vcmask 64512   ;;  %vm1218_vm5 = vcmask 97280   ;;  %vm1655_vm6 = vcmask 27648   ;;  %vm1757_vm7 = vcmask 24576  }
  0x18   : > { %s2635_s12 = sshll.u32 %s2632_s11, 8 }
  0x19   : > { %s2641_s15 = scalar_lea.vmem %s3591_s0, %s2635_s12  ;;  %s410_s18 = scalar_lea.vmem %s3592_s1, %s2635_s12 }
  0x1a   : > { %v448_v0 = vld [vmem:[%s2641_s15 + $0x10] sm:$0xff]  ;;  %v449_v1 = vld [vmem:[%s2641_s15 + $0x18] sm:$0xff]  ;;  %v510_v2 = vld [vmem:[%s410_s18] sm:$0xff] }
  0x1b   : > { %v480_v3 = vmax.f32 %v448_v0, 0.0  ;;  %v481_v4 = vmax.f32 %v449_v1, 0.0  ;;  %v511_v5 = vld [vmem:[%s410_s18 + $0x8] sm:$0xff]  ;;  %v512_v6 = vmax.f32 %v510_v2, 0.0  ;;  %v446_v7 = vld [vmem:[%s2641_s15] sm:$0xff]  ;;  %v452_v63 = vld [vmem:[%s2641_s15 + $0x30] sm:$0xff] }
  0x1c   : > { %v447_v8 = vld [vmem:[%s2641_s15 + $0x8] sm:$0xff]  ;;  %v513_v9 = vmax.f32 %v511_v5, 0.0  ;;  %v478_v10 = vmax.f32 %v446_v7, 0.0  ;;  %v450_v12 = vld [vmem:[%s2641_s15 + $0x20] sm:$0xff] }
  0x1d   : > { %v479_v11 = vmax.f32 %v447_v8, 0.0  ;;  %v451_v13 = vld [vmem:[%s2641_s15 + $0x28] sm:$0xff]  ;;  %v573_v14 = vrot.slane %v480_v3, 7  ;;  %v574_v15 = vrot.slane %v481_v4, 7  ;;  %v518_v16 = vmul.f32 0.0, %v512_v6  ;;  %v470_v46 = vld [vmem:[%s2641_s15 + $0xc0] sm:$0xff] }
  0x1e   : > { %v482_v17 = vmax.f32 %v450_v12, 0.0  ;;  %v519_v18 = vmul.f32 0.0, %v513_v9  ;;  %v570_v19 = vrot.slane %v478_v10, 7  ;;  %v483_v21 = vmax.f32 %v451_v13, 0.0  ;;  %v471_v50 = vld [vmem:[%s2641_s15 + $0xc8] sm:$0xff]  ;;  %v453_v4 = vld [vmem:[%s2641_s15 + $0x38] sm:$0xff] }
  0x1f   : > { %v571_v20 = vrot.slane %v479_v11, 7  ;;  %v2654_v22 = vsel %vm566_vm0, %v573_v14, %v574_v15  ;;  %v2657_v23 = vsel %vm566_vm0, 0.0, %v573_v14  ;;  %v695_v24 = vsel %vm566_vm0, %v574_v15, 0.0 }
  0x20   : > { %v567_v25 = vrot.slane %v518_v16, 7  ;;  %v754_v26 = vrot.slane %v2657_v23, 1  ;;  %v755_v27 = vrot.slane %v2654_v22, 1  ;;  %v757_v28 = vrot.slane %v695_v24, 1 }
  0x21   : > { %v934_v29 = vrot.slane %v695_v24, 2  ;;  %v568_v30 = vrot.slane %v519_v18, 7  ;;  %v931_v32 = vrot.slane %v2657_v23, 2  ;;  %v932_v33 = vrot.slane %v2654_v22, 2 }
  0x22   : > { %v2663_v31 = vsel %vm566_vm0, 0.0, %v567_v25  ;;  %v756_v34 = vsel %vm743_vm1, %v754_v26, %v755_v27  ;;  %v758_v35 = vsel %vm743_vm1, %v755_v27, %v757_v28  ;;  %v2671_v37 = vsel %vm566_vm0, %v570_v19, %v571_v20 }
  0x23   : > { %v744_v36 = vrot.slane %v2663_v31, 1  ;;  %v2246_v38 = vpack.i.bf16 %v758_v35, %v756_v34  ;;  %v2674_v39 = vsel %vm566_vm0, %v567_v25, %v568_v30  ;;  %v693_v40 = vsel %vm566_vm0, %v568_v30, 0.0 }
  0x24   : > { %v933_v41 = vsel %vm920_vm2, %v931_v32, %v932_v33  ;;  %v745_v42 = vrot.slane %v2674_v39, 1  ;;  %v747_v43 = vrot.slane %v693_v40, 1  ;;  %v935_v44 = vsel %vm920_vm2, %v932_v33, %v934_v29 }
  0x25   : > { %v2681_v45 = vsel %vm566_vm0, 0.0, %v570_v19  ;;  %2247 = vrot.lane.b32.xlu0 %v2246_v38, %s2538_s19  ;;  %v2686_v47 = vsel %vm566_vm0, %v571_v20, 0.0  ;;  %v750_v49 = vrot.slane %v2671_v37, 1  ;;  %v576_v54 = vrot.slane %v482_v17, 7 }
  0x26   : > { %v749_v48 = vrot.slane %v2681_v45, 1  ;;  %v746_v51 = vsel %vm743_vm1, %v744_v36, %v745_v42  ;;  %v748_v52 = vsel %vm743_vm1, %v745_v42, %v747_v43  ;;  %v752_v53 = vrot.slane %v2686_v47, 1  ;;  %v472_v36 = vld [vmem:[%s2641_s15 + $0xd0] sm:$0xff] }
  0x27   : > { %v2256_v55 = vpack.i.bf16 %v748_v52, %v746_v51  ;;  %v2251_v56 = vpack.i.bf16 %v935_v44, %v933_v41  ;;  %v577_v57 = vrot.slane %v483_v21, 7  ;;  %v502_v58 = vmax.f32 %v470_v46, 0.0 }
  0x28   : > { %v751_v59 = vsel %vm743_vm1, %v749_v48, %v750_v49  ;;  %v753_v60 = vsel %vm743_vm1, %v750_v49, %v752_v53  ;;  %v2697_v61 = vsel %vm566_vm0, 0.0, %v576_v54  ;;  %v503_v62 = vmax.f32 %v471_v50, 0.0  ;;  %v473_v49 = vld [vmem:[%s2641_s15 + $0xd8] sm:$0xff] }
  0x29   : > { %2257 = vrot.lane.b32.xlu1 %v2256_v55, %s2538_s19  ;;  %v2702_v0 = vsel %vm566_vm0, %v576_v54, %v577_v57  ;;  %v2705_v1 = vsel %vm566_vm0, %v577_v57, 0.0  ;;  %v759_v2 = vrot.slane %v2697_v61, 1  ;;  %v921_v3 = vrot.slane %v2663_v31, 2 }
  0x2a   : > { %v760_v5 = vrot.slane %v2702_v0, 1  ;;  %v762_v6 = vrot.slane %v2705_v1, 1  ;;  %v606_v7 = vrot.slane %v502_v58, 7  ;;  %v607_v8 = vrot.slane %v503_v62, 7 }
  0x2b   : > { %v2261_v9 = vpack.i.bf16 %v753_v60, %v751_v59  ;;  %v922_v10 = vrot.slane %v2674_v39, 2  ;;  %v924_v11 = vrot.slane %v693_v40, 2  ;;  %v484_v12 = vmax.f32 %v452_v63, 0.0 }
  0x2c   : > { %v761_v13 = vsel %vm743_vm1, %v759_v2, %v760_v5  ;;  %v2715_v14 = vsel %vm566_vm0, %v606_v7, %v607_v8  ;;  %v2718_v15 = vsel %vm566_vm0, 0.0, %v606_v7  ;;  %v485_v16 = vmax.f32 %v453_v4, 0.0  ;;  %v454_v2 = vld [vmem:[%s2641_s15 + $0x40] sm:$0xff] }
  0x2d   : > { %2252 = vrot.lane.b32.xlu0 %v2251_v56, %s2539_s20  ;;  %v763_v17 = vsel %vm743_vm1, %v760_v5, %v762_v6  ;;  %v706_v18 = vsel %vm566_vm0, %v607_v8, 0.0  ;;  %v809_v19 = vrot.slane %v2718_v15, 1  ;;  %v810_v20 = vrot.slane %v2715_v14, 1 }
  0x2e   : > { %v812_v21 = vrot.slane %v706_v18, 1  ;;  %v986_v24 = vrot.slane %v2718_v15, 2  ;;  %v987_v25 = vrot.slane %v2715_v14, 2  ;;  %v989_v26 = vrot.slane %v706_v18, 2 }
  0x2f   : > { %v811_v27 = vsel %vm743_vm1, %v809_v19, %v810_v20  ;;  %v923_v28 = vsel %vm920_vm2, %v921_v3, %v922_v10  ;;  %v925_v29 = vsel %vm920_vm2, %v922_v10, %v924_v11  ;;  %v579_v30 = vrot.slane %v484_v12, 7  ;;  %v455_v11 = vld [vmem:[%s2641_s15 + $0x48] sm:$0xff]  ;;  %v474_v12 = vld [vmem:[%s2641_s15 + $0xe0] sm:$0xff] }
  0x30   : > { %v2276_v32 = vpack.i.bf16 %v763_v17, %v761_v13  ;;  %v813_v33 = vsel %vm743_vm1, %v810_v20, %v812_v21  ;;  %v988_v34 = vsel %vm920_vm2, %v986_v24, %v987_v25  ;;  %v2266_v35 = vpack.i.bf16 %v925_v29, %v923_v28  ;;  %v475_v19 = vld [vmem:[%s2641_s15 + $0xe8] sm:$0xff] }
  0x31   : > { %2262 = vrot.lane.b32.xlu1 %v2261_v9, %s2538_s19  ;;  %v2281_v38 = vpack.i.bf16 %v813_v33, %v811_v27  ;;  %v990_v40 = vsel %vm920_vm2, %v987_v25, %v989_v26  ;;  %v580_v41 = vrot.slane %v485_v16, 7  ;;  %v2736_v42 = vsel %vm566_vm0, 0.0, %v579_v30 }
  0x32   : > { %2267 = vrot.lane.b32.xlu2 %v2266_v35, %s2539_s20  ;;  %v764_v43 = vrot.slane %v2736_v42, 1  ;;  %v941_v44 = vrot.slane %v2736_v42, 2  ;;  %v926_v46 = vrot.slane %v2681_v45, 2  ;;  %v927_v48 = vrot.slane %v2671_v37, 2 }
  0x33   : > { %v2745_v50 = vsel %vm566_vm0, %v579_v30, %v580_v41  ;;  %v697_v51 = vsel %vm566_vm0, %v580_v41, 0.0  ;;  %v929_v52 = vrot.slane %v2686_v47, 2  ;;  %v504_v53 = vmax.f32 %v472_v36, 0.0  ;;  %v456_v36 = vld [vmem:[%s2641_s15 + $0x50] sm:$0xff] }
  0x34   : > { %v765_v54 = vrot.slane %v2745_v50, 1  ;;  %v767_v55 = vrot.slane %v697_v51, 1  ;;  %v942_v56 = vrot.slane %v2745_v50, 2  ;;  %v944_v57 = vrot.slane %v697_v51, 2  ;;  %v457_v51 = vld [vmem:[%s2641_s15 + $0x58] sm:$0xff] }
  0x35   : > { %2277 = vrot.lane.b32.xlu0 %v2276_v32, %s2538_s19  ;;  %v928_v58 = vsel %vm920_vm2, %v926_v46, %v927_v48  ;;  %v930_v59 = vsel %vm920_vm2, %v927_v48, %v929_v52  ;;  %v505_v60 = vmax.f32 %v473_v49, 0.0  ;;  %v609_v62 = vrot.slane %v504_v53, 7 }
  0x36   : > { %v2291_v63 = vpack.i.bf16 %v990_v40, %v988_v34  ;;  %v766_v47 = vsel %vm743_vm1, %v764_v43, %v765_v54  ;;  %v768_v3 = vsel %vm743_vm1, %v765_v54, %v767_v55  ;;  %v2758_v4 = vsel %vm920_vm2, %v941_v44, %v942_v56 }
  0x37   : > { %v2271_v5 = vpack.i.bf16 %v930_v59, %v928_v58  ;;  %v610_v6 = vrot.slane %v505_v60, 7  ;;  %v2761_v7 = vsel %vm566_vm0, 0.0, %v609_v62  ;;  %v936_v8 = vrot.slane %v2697_v61, 2  ;;  %v476_v60 = vld [vmem:[%s2641_s15 + $0xf0] sm:$0xff] }
  0x38   : > { %v937_v9 = vrot.slane %v2702_v0, 2  ;;  %v939_v10 = vrot.slane %v2705_v1, 2  ;;  %v945_v13 = vsel %vm920_vm2, %v942_v56, %v944_v57  ;;  %v486_v18 = vmax.f32 %v454_v2, 0.0  ;;  %v477_v2 = vld [vmem:[%s2641_s15 + $0xf8] sm:$0xff] }
  0x39   : > { %2282 = vrot.lane.b32.xlu1 %v2281_v38, %s2538_s19  ;;  %v2771_v16 = vsel %vm566_vm0, %v609_v62, %v610_v6  ;;  %v707_v17 = vsel %vm566_vm0, %v610_v6, 0.0  ;;  %v991_v20 = vrot.slane %v2761_v7, 2  ;;  %v487_v26 = vmax.f32 %v455_v11, 0.0 }
  0x3a   : > { %2272 = vrot.lane.b32.xlu2 %v2271_v5, %s2539_s20  ;;  %v992_v1 = vrot.slane %v2771_v16, 2  ;;  %v938_v21 = vsel %vm920_vm2, %v936_v8, %v937_v9  ;;  %v940_v24 = vsel %vm920_vm2, %v937_v9, %v939_v10  ;;  %v994_v25 = vrot.slane %v707_v17, 2 }
  0x3b   : > { %v582_v27 = vrot.slane %v486_v18, 7  ;;  %v506_v28 = vmax.f32 %v474_v12, 0.0  ;;  %v2296_v29 = vpack.i.bf16 %v768_v3, %v766_v47  ;;  %v507_v30 = vmax.f32 %v475_v19, 0.0 }
  0x3c   : > { %v2306_v32 = vpack.i.bf16 %v945_v13, %v2758_v4  ;;  %v2286_v33 = vpack.i.bf16 %v940_v24, %v938_v21  ;;  %v583_v34 = vrot.slane %v487_v26, 7  ;;  %v814_v40 = vrot.slane %v2761_v7, 1 }
  0x3d   : > { %2292 = vrot.lane.b32.xlu0 %v2291_v63, %s2539_s20  ;;  %v612_v35 = vrot.slane %v506_v28, 7  ;;  %v613_v38 = vrot.slane %v507_v30, 7  ;;  %v815_v41 = vrot.slane %v2771_v16, 1  ;;  %v817_v43 = vrot.slane %v707_v17, 1 }
  0x3e   : > { %v993_v44 = vsel %vm920_vm2, %v991_v20, %v992_v1  ;;  %v995_v46 = vsel %vm920_vm2, %v992_v1, %v994_v25  ;;  %v2788_v48 = vsel %vm566_vm0, 0.0, %v582_v27  ;;  %v2795_v52 = vsel %vm566_vm0, %v582_v27, %v583_v34 }
  0x3f   : > { %v2791_v49 = vsel %vm566_vm0, 0.0, %v612_v35  ;;  %v2798_v53 = vsel %vm566_vm0, %v612_v35, %v613_v38  ;;  %v2801_v54 = vsel %vm566_vm0, %v613_v38, 0.0  ;;  %v488_v55 = vmax.f32 %v456_v36, 0.0  ;;  %v458_v38 = vld [vmem:[%s2641_s15 + $0x60] sm:$0xff] }
  0x40   : > { %v698_v56 = vsel %vm566_vm0, %v583_v34, 0.0  ;;  %v819_v57 = vrot.slane %v2791_v49, 1  ;;  %v820_v58 = vrot.slane %v2798_v53, 1  ;;  %v822_v59 = vrot.slane %v2801_v54, 1 }
  0x41   : > { %2297 = vrot.lane.b32.xlu1 %v2296_v29, %s2538_s19  ;;  %v816_v62 = vsel %vm743_vm1, %v814_v40, %v815_v41  ;;  %v818_v63 = vsel %vm743_vm1, %v815_v41, %v817_v43  ;;  %v489_v47 = vmax.f32 %v457_v51, 0.0  ;;  %v2311_v3 = vpack.i.bf16 %v995_v46, %v993_v44  ;;  %v459_v43 = vld [vmem:[%s2641_s15 + $0x68] sm:$0xff] }
  0x42   : > { %2287 = vrot.lane.b32.xlu2 %v2286_v33, %s2539_s20  ;;  %v946_v4 = vrot.slane %v2788_v48, 2  ;;  %v947_v5 = vrot.slane %v2795_v52, 2  ;;  %v949_v6 = vrot.slane %v698_v56, 2  ;;  %v585_v8 = vrot.slane %v488_v55, 7 }
  0x43   : > { %v586_v9 = vrot.slane %v489_v47, 7  ;;  %v508_v10 = vmax.f32 %v476_v60, 0.0  ;;  %v821_v11 = vsel %vm743_vm1, %v819_v57, %v820_v58  ;;  %v823_v12 = vsel %vm743_vm1, %v820_v58, %v822_v59 }
  0x44   : > { %v2301_v13 = vpack.i.bf16 %v818_v63, %v816_v62  ;;  %v509_v17 = vmax.f32 %v477_v2, 0.0  ;;  %v2822_v19 = vsel %vm566_vm0, 0.0, %v585_v8  ;;  %v769_v24 = vrot.slane %v2788_v48, 1  ;;  %v468_v2 = vld [vmem:[%s2641_s15 + $0xb0] sm:$0xff] }
  0x45   : > { %2307 = vrot.lane.b32.xlu0 %v2306_v32, %s2539_s20  ;;  %v2819_v18 = vsel %vm566_vm0, %v585_v8, %v586_v9  ;;  %v2825_v20 = vsel %vm566_vm0, %v586_v9, 0.0  ;;  %v615_v1 = vrot.slane %v508_v10, 7  ;;  %v770_v25 = vrot.slane %v2795_v52, 1 }
  0x46   : > { %v616_v21 = vrot.slane %v509_v17, 7  ;;  %v772_v26 = vrot.slane %v698_v56, 1  ;;  %v774_v27 = vrot.slane %v2822_v19, 1  ;;  %v775_v28 = vrot.slane %v2819_v18, 1 }
  0x47   : > { %v777_v29 = vrot.slane %v2825_v20, 1  ;;  %v948_v30 = vsel %vm920_vm2, %v946_v4, %v947_v5  ;;  %v950_v32 = vsel %vm920_vm2, %v947_v5, %v949_v6  ;;  %v2321_v33 = vpack.i.bf16 %v823_v12, %v821_v11 }
  0x48   : > { %v2837_v34 = vsel %vm566_vm0, %v615_v1, %v616_v21  ;;  %v2840_v35 = vsel %vm566_vm0, 0.0, %v615_v1  ;;  %v709_v36 = vsel %vm566_vm0, %v616_v21, 0.0  ;;  %v771_v40 = vsel %vm743_vm1, %v769_v24, %v770_v25 }
  0x49   : > { %2312 = vrot.lane.b32.xlu1 %v2311_v3, %s2539_s20  ;;  %v773_v41 = vsel %vm743_vm1, %v770_v25, %v772_v26  ;;  %v2326_v44 = vpack.i.bf16 %v950_v32, %v948_v30  ;;  %v776_v46 = vsel %vm743_vm1, %v774_v27, %v775_v28  ;;  %v778_v51 = vsel %vm743_vm1, %v775_v28, %v777_v29  ;;  %v469_v3 = vld [vmem:[%s2641_s15 + $0xb8] sm:$0xff]  ;;  %v460_v28 = vld [vmem:[%s2641_s15 + $0x70] sm:$0xff] }
  0x4a   : > { %2302 = vrot.lane.b32.xlu2 %v2301_v13, %s2538_s19  ;;  %v996_v55 = vrot.slane %v2791_v49, 2  ;;  %v1183_v56 = vrot.slane %v2840_v35, 1  ;;  %v1184_v57 = vrot.slane %v2837_v34, 1  ;;  %v1186_v58 = vrot.slane %v709_v36, 1  ;;  %v461_v29 = vld [vmem:[%s2641_s15 + $0x78] sm:$0xff] }
  0x4b   : > { %v490_v59 = vmax.f32 %v458_v38, 0.0  ;;  %v2316_v60 = vpack.i.bf16 %v773_v41, %v771_v40  ;;  %v997_v62 = vrot.slane %v2798_v53, 2  ;;  %v999_v63 = vrot.slane %v2801_v54, 2 }
  0x4c   : > { %v491_v47 = vmax.f32 %v459_v43, 0.0  ;;  %v2336_v4 = vpack.i.bf16 %v778_v51, %v776_v46  ;;  %v1194_v6 = vrot.slane %v2840_v35, 2  ;;  %v1195_v8 = vrot.slane %v2837_v34, 2 }
  0x4d   : > { %2322 = vrot.lane.b32.xlu0 %v2321_v33, %s2538_s19  ;;  %v588_v5 = vrot.slane %v490_v59, 7  ;;  %v1197_v9 = vrot.slane %v709_v36, 2  ;;  %v1185_v11 = vsel %vm743_vm1, %v1183_v56, %v1184_v57  ;;  %v1187_v12 = vsel %vm743_vm1, %v1184_v57, %v1186_v58 }
  0x4e   : > { %v589_v10 = vrot.slane %v491_v47, 7  ;;  %v500_v54 = vmax.f32 %v468_v2, 0.0  ;;  %v501_v13 = vmax.f32 %v469_v3, 0.0  ;;  %v998_v17 = vsel %vm920_vm2, %v996_v55, %v997_v62 }
  0x4f   : > { %v1000_v1 = vsel %vm920_vm2, %v997_v62, %v999_v63  ;;  %v2869_v24 = vsel %vm566_vm0, 0.0, %v588_v5  ;;  %v2341_v26 = vpack.i.bf16 %v1187_v12, %v1185_v11  ;;  %v1196_v27 = vsel %vm920_vm2, %v1194_v6, %v1195_v8 }
  0x50   : > { %v2866_v21 = vsel %vm566_vm0, %v588_v5, %v589_v10  ;;  %v700_v25 = vsel %vm566_vm0, %v589_v10, 0.0  ;;  %v1198_v30 = vsel %vm920_vm2, %v1195_v8, %v1197_v9  ;;  %v2331_v32 = vpack.i.bf16 %v1000_v1, %v998_v17 }
  0x51   : > { %2327 = vrot.lane.b32.xlu1 %v2326_v44, %s2539_s20  ;;  %v603_v33 = vrot.slane %v500_v54, 7  ;;  %v604_v36 = vrot.slane %v501_v13, 7  ;;  %v779_v38 = vrot.slane %v2869_v24, 1  ;;  %v780_v40 = vrot.slane %v2866_v21, 1 }
  0x52   : > { %2317 = vrot.lane.b32.xlu2 %v2316_v60, %s2538_s19  ;;  %v782_v41 = vrot.slane %v700_v25, 1  ;;  %v951_v43 = vrot.slane %v2822_v19, 2  ;;  %v952_v44 = vrot.slane %v2819_v18, 2  ;;  %v954_v46 = vrot.slane %v2825_v20, 2 }
  0x53   : > { %v492_v51 = vmax.f32 %v460_v28, 0.0  ;;  %v493_v55 = vmax.f32 %v461_v29, 0.0  ;;  %v956_v56 = vrot.slane %v2869_v24, 2  ;;  %v957_v57 = vrot.slane %v2866_v21, 2 }
  0x54   : > { %v2351_v58 = vpack.i.bf16 %v1198_v30, %v1196_v27  ;;  %v959_v59 = vrot.slane %v700_v25, 2  ;;  %v2886_v60 = vsel %vm566_vm0, %v603_v33, %v604_v36  ;;  %v781_v62 = vsel %vm743_vm1, %v779_v38, %v780_v40 }
  0x55   : > { %2337 = vrot.lane.b32.xlu0 %v2336_v4, %s2538_s19  ;;  %v783_v63 = vsel %vm743_vm1, %v780_v40, %v782_v41  ;;  %v2892_v20 = vsel %vm566_vm0, 0.0, %v603_v33  ;;  %v705_v47 = vsel %vm566_vm0, %v604_v36, 0.0  ;;  %v953_v2 = vsel %vm920_vm2, %v951_v43, %v952_v44 }
  0x56   : > { %v955_v3 = vsel %vm920_vm2, %v952_v44, %v954_v46  ;;  %v591_v4 = vrot.slane %v492_v51, 7  ;;  %v592_v5 = vrot.slane %v493_v55, 7  ;;  %v958_v6 = vsel %vm920_vm2, %v956_v56, %v957_v57  ;;  %v462_v55 = vld [vmem:[%s2641_s15 + $0x80] sm:$0xff]  ;;  %v463_v56 = vld [vmem:[%s2641_s15 + $0x88] sm:$0xff] }
  0x57   : > { %v2356_v8 = vpack.i.bf16 %v783_v63, %v781_v62  ;;  %v960_v9 = vsel %vm920_vm2, %v957_v57, %v959_v59  ;;  %v981_v10 = vrot.slane %v2892_v20, 2  ;;  %v982_v11 = vrot.slane %v2886_v60, 2 }
  0x58   : > { %v984_v12 = vrot.slane %v705_v47, 2  ;;  %v2346_v54 = vpack.i.bf16 %v955_v3, %v953_v2  ;;  %v804_v13 = vrot.slane %v2892_v20, 1  ;;  %v805_v17 = vrot.slane %v2886_v60, 1 }
  0x59   : > { %2342 = vrot.lane.b32.xlu1 %v2341_v26, %s2538_s19  ;;  %v2905_v1 = vsel %vm566_vm0, %v591_v4, %v592_v5  ;;  %v2908_v25 = vsel %vm566_vm0, 0.0, %v591_v4  ;;  %v701_v26 = vsel %vm566_vm0, %v592_v5, 0.0  ;;  %v807_v27 = vrot.slane %v705_v47, 1 }
  0x5a   : > { %2332 = vrot.lane.b32.xlu2 %v2331_v32, %s2539_s20  ;;  %v2366_v28 = vpack.i.bf16 %v960_v9, %v958_v6  ;;  %v983_v29 = vsel %vm920_vm2, %v981_v10, %v982_v11  ;;  %v985_v30 = vsel %vm920_vm2, %v982_v11, %v984_v12  ;;  %v961_v32 = vrot.slane %v2908_v25, 2  ;;  %v2130_v9 = vld [vmem:[%s3594_s3] sm:$0xf]  ;;  %v2177_v10 = vld [vmem:[%s3594_s3] sm:$0x30] }
  0x5b   : > { %v962_v33 = vrot.slane %v2905_v1, 2  ;;  %v964_v36 = vrot.slane %v701_v26, 2  ;;  %v806_v38 = vsel %vm743_vm1, %v804_v13, %v805_v17  ;;  %v808_v40 = vsel %vm743_vm1, %v805_v17, %v807_v27  ;;  %v2152_v13 = vld [vmem:[%s3594_s3 + $0x10] sm:$0xf]  ;;  %v2179_v17 = vld [vmem:[%s3594_s3 + $0x10] sm:$0x30] }
  0x5c   : > { %v2371_v41 = vpack.i.bf16 %v985_v30, %v983_v29  ;;  %v2361_v46 = vpack.i.bf16 %v808_v40, %v806_v38  ;;  %v494_v57 = vmax.f32 %v462_v55, 0.0  ;;  %v2131_v12 = vor.u32 %v2177_v10, %v2130_v9  ;;  %v2110_v38 = vld [vmem:[%s3594_s3 + $0x8] sm:$0xf]  ;;  %v2178_v40 = vld [vmem:[%s3594_s3 + $0x8] sm:$0x30] }
  0x5d   : > { %2352 = vrot.lane.b32.xlu0 %v2351_v58, %s2539_s20  ;;  %v963_v43 = vsel %vm920_vm2, %v961_v32, %v962_v33  ;;  %v965_v44 = vsel %vm920_vm2, %v962_v33, %v964_v36  ;;  %v495_v58 = vmax.f32 %v463_v56, 0.0  ;;  %v2153_v27 = vor.u32 %v2179_v17, %v2152_v13 }
  0x5e   : > { %v2381_v51 = vpack.i.bf16 %v965_v44, %v963_v43  ;;  %v594_v59 = vrot.slane %v494_v57, 7  ;;  %v785_v29 = vrot.slane %v2905_v1, 1  ;;  %v787_v30 = vrot.slane %v701_v26, 1  ;;  %v465_v44 = vld [vmem:[%s2641_s15 + $0x98] sm:$0xff] }
  0x5f   : > { %v595_v62 = vrot.slane %v495_v58, 7  ;;  %v2955_v32 = vsel %vm920_vm2, %v2153_v27, 0  ;;  %v2111_v26 = vor.u32 %v2178_v40, %v2110_v38  ;;  %v467_v38 = vld [vmem:[%s2641_s15 + $0xa8] sm:$0xff] }
  0x60   : > { %v2931_v47 = vsel %vm566_vm0, 0.0, %v594_v59  ;;  %v788_v36 = vsel %vm743_vm1, %v785_v29, %v787_v30  ;;  %1509 = vmatpush.bf16.msra.mxu2 %v2955_v32 }
  0x61   : > { %2357 = vrot.lane.b32.xlu1 %v2356_v8, %s2538_s19  ;;  %v2928_v63 = vsel %vm566_vm0, %v594_v59, %v595_v62  ;;  %v702_v2 = vsel %vm566_vm0, %v595_v62, 0.0  ;;  %v789_v3 = vrot.slane %v2931_v47, 1  ;;  %v1268_v55 = vsel %vm920_vm2, %v2111_v26, 0 }
  0x62   : > { %2347 = vrot.lane.b32.xlu2 %v2346_v54, %s2539_s20  ;;  %v790_v4 = vrot.slane %v2928_v63, 1  ;;  %v792_v5 = vrot.slane %v702_v2, 1  ;;  %v1368_v54 = vsel %vm920_vm2, %v2131_v12, 0  ;;  %1277 = vmatpush.bf16.msra.mxu0 %v1268_v55  ;;  %v966_v27 = vrot.slane %v2931_v47, 2 }
  0x63   : > { %1377 = vmatpush.bf16.msra.mxu1 %v1368_v54  ;;  %2181 = vmatpush.bf16.msra.mxu3 %v1268_v55  ;;  %v499_v26 = vmax.f32 %v467_v38, 0.0 }
  0x64   : > { %v791_v6 = vsel %vm743_vm1, %v789_v3, %v790_v4  ;;  %v793_v8 = vsel %vm743_vm1, %v790_v4, %v792_v5 }
  0x65   : > { %2367 = vrot.lane.b32.xlu0 %v2366_v28, %s2539_s20  ;;  %v2386_v11 = vpack.i.bf16 %v793_v8, %v791_v6  ;;  %v784_v28 = vrot.slane %v2908_v25, 1 }
  0x67   : > { %v786_v33 = vsel %vm743_vm1, %v784_v28, %v785_v29  ;;  %2182 = vmatpush.bf16.msrb.mxu3 %v1368_v54  ;;  %v967_v28 = vrot.slane %v2928_v63, 2  ;;  %v969_v29 = vrot.slane %v702_v2, 2 }
  0x68   : > { %v2376_v43 = vpack.i.bf16 %v788_v36, %v786_v33  ;;  %v466_v36 = vld [vmem:[%s2641_s15 + $0xa0] sm:$0xff] }
  0x69   : > { %2372 = vrot.lane.b32.xlu1 %v2371_v41, %s2539_s20  ;;  %v464_v41 = vld [vmem:[%s2641_s15 + $0x90] sm:$0xff]  ;;  %v968_v30 = vsel %vm920_vm2, %v966_v27, %v967_v28  ;;  %v970_v33 = vsel %vm920_vm2, %v967_v28, %v969_v29  ;;  %s2175_s15 = sadd.s32 240, %s2635_s12  ;;  %s2176_s12 = sshll.u32 %s2632_s11, 7 }
  0x6a   : > { %2362 = vrot.lane.b32.xlu2 %v2361_v46, %s2538_s19  ;;  %v496_v46 = vmax.f32 %v464_v41, 0.0  ;;  %v2391_v41 = vpack.i.bf16 %v970_v33, %v968_v30  ;;  %s427_s14 = scalar_lea.vmem %s3593_s2, %s2175_s15  ;;  %s3208_s16 = scalar_lea.vmem %s3595_s4, %s2176_s12 }
  0x6b   : > { %s3515_s11 = sand.u32 1, %s2520_s22   ;;  %s1903_s15 = scalar_lea.hbm %s3597_s6, %s2528_s24 }
  0x6c   : > { %v597_v56 = vrot.slane %v496_v46, 7  ;;  %s380_s8 = scalar_lea.vmem [#allocation2], %s3515_s11  ;;  %s386_s12 = scalar_lea.vmem [#allocation4], %s3515_s11 }
  0x6d   : > { %2382 = vrot.lane.b32.xlu0 %v2381_v51, %s2539_s20  ;;  %v497_v51 = vmax.f32 %v465_v44, 0.0  ;;  %s3526_s13 = sshll.u32 %s380_s8, 4  ;;  %s1872_s24 = scalar_lea.sflag [#allocation3], %s3515_s11  ;;  %s1892_s13 = int_to_ptr.vmem [resolvable:$true] %s3526_s13 }
  0x6e   : > { %v2971_v58 = vsel %vm566_vm0, 0.0, %v597_v56 }
  0x6f   : > { %v598_v57 = vrot.slane %v497_v51, 7  ;;  %v794_v3 = vrot.slane %v2971_v58, 1  ;;  %v971_v6 = vrot.slane %v2971_v58, 2  ;;  %v601_v51 = vrot.slane %v499_v26, 7 }
  0x71   : > { %2387 = vrot.lane.b32.xlu1 %v2386_v11, %s2538_s19  ;;  %v2974_v59 = vsel %vm566_vm0, %v597_v56, %v598_v57  ;;  %v703_v62 = vsel %vm566_vm0, %v598_v57, 0.0  ;;  %v3001_v57 = vsel %vm566_vm0, %v601_v51, 0.0 }
  0x72   : > { %2377 = vrot.lane.b32.xlu2 %v2376_v43, %s2538_s19  ;;  %v795_v4 = vrot.slane %v2974_v59, 1  ;;  %v797_v5 = vrot.slane %v703_v62, 1  ;;  %v972_v8 = vrot.slane %v2974_v59, 2  ;;  %v974_v9 = vrot.slane %v703_v62, 2 }
  0x73   : > { %v498_v43 = vmax.f32 %v466_v36, 0.0 }
  0x74   : > { %v796_v10 = vsel %vm743_vm1, %v794_v3, %v795_v4  ;;  %v798_v11 = vsel %vm743_vm1, %v795_v4, %v797_v5  ;;  %v973_v12 = vsel %vm920_vm2, %v971_v6, %v972_v8  ;;  %v975_v13 = vsel %vm920_vm2, %v972_v8, %v974_v9 }
  0x75   : > { %v2396_v54 = vpack.i.bf16 %v798_v11, %v796_v10  ;;  %v2401_v17 = vpack.i.bf16 %v975_v13, %v973_v12  ;;  %v600_v46 = vrot.slane %v498_v43, 7  ;;  %v979_v6 = vrot.slane %v3001_v57, 2 }
  0x77   : > { %2397 = vrot.lane.b32.xlu0 %v2396_v54, %s2538_s19  ;;  %v2995_v55 = vsel %vm566_vm0, 0.0, %v600_v46  ;;  %v2998_v2 = vsel %vm566_vm0, %v600_v46, %v601_v51 }
  0x78   : > { %v976_v4 = vrot.slane %v2995_v55, 2  ;;  %v977_v5 = vrot.slane %v2998_v2, 2 }
  0x79   : > { %2402 = vrot.lane.b32.xlu1 %v2401_v17, %s2539_s20 }
  0x7a   : > { %2392 = vrot.lane.b32.xlu2 %v2391_v41, %s2539_s20  ;;  %v978_v12 = vsel %vm920_vm2, %v976_v4, %v977_v5  ;;  %v980_v54 = vsel %vm920_vm2, %v977_v5, %v979_v6 }
  0x7b   : > { %v2411_v27 = vpack.i.bf16 %v980_v54, %v978_v12 }
  0x7f   : > { %2412 = vrot.lane.b32.xlu0 %v2411_v27, %s2539_s20 }
  0x8c   : > { %v2268_v40 = vpop.permute.xlu2 %2267 }
  0x8d   : > { %v2270_v56 = vunpack.i.h.bf16 %v2268_v40  ;;  %v2269_v62 = vunpack.i.l.bf16 %v2268_v40 }
  0x94   : > { %v2273_v33 = vpop.permute.xlu2 %2272 }
  0x95   : > { %v2275_v26 = vunpack.i.h.bf16 %v2273_v33 }
  0x97   : > { %v2248_v44 = vpop.permute.xlu0 %2247 }
  0x98   : > { %v2250_v10 = vunpack.i.h.bf16 %v2248_v44  ;;  %v2249_v11 = vunpack.i.l.bf16 %v2248_v44  ;;  %v2274_v44 = vunpack.i.l.bf16 %v2273_v33 }
  0x9a   : > { %v1103_v41 = vsel %vm1097_vm3, %v2654_v22, %v2250_v10 }
  0x9b   : > { %v2258_v3 = vpop.permute.xlu1 %2257 }
  0x9c   : > { %v2260_v8 = vunpack.i.h.bf16 %v2258_v3  ;;  %v2259_v9 = vunpack.i.l.bf16 %v2258_v3  ;;  %v2288_v10 = vpop.permute.xlu2 %2287 }
  0x9d   : > { %v2290_v12 = vunpack.i.h.bf16 %v2288_v10  ;;  %v2289_v54 = vunpack.i.l.bf16 %v2288_v10 }
  0x9e   : > { %v1099_v13 = vsel %vm1097_vm3, %v2674_v39, %v2260_v8  ;;  %v1098_v17 = vsel %vm1097_vm3, %v2663_v31, %v2259_v9  ;;  %v1102_v39 = vsel %vm1097_vm3, %v2657_v23, %v2249_v11 }
  0x9f   : > { %v2253_v28 = vpop.permute.xlu0 %2252  ;;  %v1131_v29 = vsel %vm1130_vm4, %v1098_v17, %v2269_v62  ;;  %v1132_v30 = vsel %vm1130_vm4, %v1099_v13, %v2270_v56 }
  0xa0   : > { %v2255_v36 = vunpack.i.h.bf16 %v2253_v28  ;;  %v2254_v38 = vunpack.i.l.bf16 %v2253_v28  ;;  %v1163_v40 = vpack.c.bf16 %v1132_v30, %v1131_v29 }
  0xa2   : > { %2132 = vmatmul.msk.bf16.vlgmr.msra.gmra.mxu1 %vm1218_vm5, %v1163_v40  ;;  %v1135_v31 = vsel %vm1130_vm4, %v1102_v39, %v2254_v38  ;;  %v1136_v43 = vsel %vm1130_vm4, %v1103_v41, %v2255_v36  ;;  %v799_v40 = vrot.slane %v2995_v55, 1  ;;  %v802_v41 = vrot.slane %v3001_v57, 1 }
  0xa3   : > { %v2263_v46 = vpop.permute.xlu1 %2262  ;;  %v3022_v51 = vpack.c.bf16 %v1136_v43, %v1135_v31 }
  0xa4   : > { %v2265_v56 = vunpack.i.h.bf16 %v2263_v46  ;;  %v2264_v62 = vunpack.i.l.bf16 %v2263_v46  ;;  %v2303_v43 = vpop.permute.xlu2 %2302 }
  0xa5   : > { %2154 = vmatmul.msk.bf16.vlgmr.msra.gmra.mxu2 %vm1218_vm5, %v3022_v51  ;;  %v2305_v57 = vunpack.i.h.bf16 %v2303_v43 }
  0xa6   : > { %v1101_v22 = vsel %vm1097_vm3, %v2671_v37, %v2265_v56  ;;  %v1100_v23 = vsel %vm1097_vm3, %v2681_v45, %v2264_v62  ;;  %v2304_v56 = vunpack.i.l.bf16 %v2303_v43 }
  0xa7   : > { %v2278_v3 = vpop.permute.xlu0 %2277  ;;  %v1133_v4 = vsel %vm1130_vm4, %v1100_v23, %v2274_v44  ;;  %v1134_v5 = vsel %vm1130_vm4, %v1101_v22, %v2275_v26 }
  0xa8   : > { %v1164_v6 = vpack.c.bf16 %v1134_v5, %v1133_v4  ;;  %v2280_v8 = vunpack.i.h.bf16 %v2278_v3  ;;  %v2279_v9 = vunpack.i.l.bf16 %v2278_v3  ;;  %v1127_v3 = vsel %vm1097_vm3, %v2771_v16, %v2305_v57 }
  0xa9   : > { %v1126_v4 = vsel %vm1097_vm3, %v2761_v7, %v2304_v56 }
  0xaa   : > { %2112 = vmatmul.msk.bf16.vlgmr.msra.gmra.mxu0 %vm1218_vm5, %v1164_v6  ;;  %v1105_v37 = vsel %vm1097_vm3, %v2702_v0, %v2280_v8  ;;  %v1104_v45 = vsel %vm1097_vm3, %v2697_v61, %v2279_v9  ;;  %v800_v0 = vrot.slane %v2998_v2, 1 }
  0xab   : > { %v2283_v11 = vpop.permute.xlu1 %2282  ;;  %v1137_v36 = vsel %vm1130_vm4, %v1104_v45, %v2289_v54  ;;  %v1138_v38 = vsel %vm1130_vm4, %v1105_v37, %v2290_v12  ;;  %v520_v37 = vld [vmem:[%s427_s14] sm:$0xff] }
  0xac   : > { %v2285_v13 = vunpack.i.h.bf16 %v2283_v11  ;;  %v2284_v17 = vunpack.i.l.bf16 %v2283_v11  ;;  %v3051_v39 = vpack.c.bf16 %v1138_v38, %v1137_v36  ;;  %v801_v26 = vsel %vm743_vm1, %v799_v40, %v800_v0  ;;  %v2318_v12 = vpop.permute.xlu2 %2317 }
  0xad   : > { %v803_v44 = vsel %vm743_vm1, %v800_v0, %v802_v41  ;;  %v2320_v41 = vunpack.i.h.bf16 %v2318_v12 }
  0xae   : > { %v1125_v27 = vsel %vm1097_vm3, %v2715_v14, %v2285_v13  ;;  %v1124_v28 = vsel %vm1097_vm3, %v2718_v15, %v2284_v17  ;;  %v2406_v46 = vpack.i.bf16 %v803_v44, %v801_v26 }
  0xaf   : > { %v2293_v29 = vpop.permute.xlu0 %2292 }
  0xb0   : > { %v2295_v30 = vunpack.i.h.bf16 %v2293_v29  ;;  %v2294_v33 = vunpack.i.l.bf16 %v2293_v29  ;;  %2407 = vrot.lane.b32.xlu2 %v2406_v46, %s2538_s19 }
  0xb2   : > { %2133 = vmatmul.msk.bf16.gmra.mxu1 %vm1218_vm5, %v1164_v6  ;;  %v1157_v61 = vsel %vm1130_vm4, %v1124_v28, %v2294_v33  ;;  %v1158_v14 = vsel %vm1130_vm4, %v1125_v27, %v2295_v30 }
  0xb3   : > { %v3049_v15 = vpack.c.bf16 %v1158_v14, %v1157_v61  ;;  %v2298_v31 = vpop.permute.xlu1 %2297  ;;  %v2319_v61 = vunpack.i.l.bf16 %v2318_v12 }
  0xb4   : > { %v2300_v62 = vunpack.i.h.bf16 %v2298_v31  ;;  %v2299_v22 = vunpack.i.l.bf16 %v2298_v31  ;;  %v2333_v40 = vpop.permute.xlu2 %2332 }
  0xb5   : > { %2124 = vmatmul.msk.bf16.vlgmr.msra.gmra.mxu3 %vm1218_vm5, %v3049_v15  ;;  %2155 = vmatmul.msk.bf16.gmra.mxu2 %vm1218_vm5, %v3051_v39  ;;  %v2335_v44 = vunpack.i.h.bf16 %v2333_v40  ;;  %v2334_v46 = vunpack.i.l.bf16 %v2333_v40 }
  0xb6   : > { %2183 = vmatpush.bf16.msra.mxu3 %v2955_v32  ;;  %v1107_v10 = vsel %vm1097_vm3, %v2745_v50, %v2300_v62  ;;  %v1106_v11 = vsel %vm1097_vm3, %v2736_v42, %v2299_v22  ;;  %v521_v50 = vld [vmem:[%s427_s14 + $0x8] sm:$0xff]  ;;  %v522_v42 = vmax.f32 %v520_v37, 0.0  ;;  %s3528_s14 = sshll.u32 %s1889_s27, 4  ;;  %s1894_s14 = int_to_ptr.hbm [resolvable:$true] %s3528_s14 }
  0xb7   : > { %v2308_v23 = vpop.permute.xlu0 %2307  ;;  %v523_v45 = vmax.f32 %v521_v50, 0.0 }
  0xb8   : > { %v2310_v6 = vunpack.i.h.bf16 %v2308_v23  ;;  %v2309_v8 = vunpack.i.l.bf16 %v2308_v23  ;;  %v528_v29 = vmul.f32 0.0, %v522_v42 }
  0xb9   : > { %v529_v30 = vmul.f32 0.0, %v523_v45 }
  0xba   : > { %2113 = vmatmul.msk.bf16.gmra.mxu0 %vm1218_vm5, %v3022_v51  ;;  %v1139_v7 = vsel %vm1130_vm4, %v1106_v11, %v2309_v8  ;;  %v1140_v13 = vsel %vm1130_vm4, %v1107_v10, %v2310_v6  ;;  %v618_v33 = vrot.slane %v528_v29, 7  ;;  %v1108_v6 = vsel %vm1097_vm3, %v2788_v48, %v2319_v61 }
  0xbb   : > { %v2313_v5 = vpop.permute.xlu1 %2312  ;;  %v3083_v27 = vpack.c.bf16 %v1140_v13, %v1139_v7  ;;  %v619_v0 = vrot.slane %v529_v30, 7 }
  0xbc   : > { %v2315_v9 = vunpack.i.h.bf16 %v2313_v5  ;;  %v2314_v32 = vunpack.i.l.bf16 %v2313_v5  ;;  %v1109_v5 = vsel %vm1097_vm3, %v2795_v52, %v2320_v41  ;;  %v2348_v50 = vpop.permute.xlu2 %2347 }
  0xbd   : > { %v3093_v31 = vsel %vm566_vm0, %v618_v33, %v619_v0  ;;  %v710_v43 = vsel %vm566_vm0, %v619_v0, 0.0  ;;  %v2350_v29 = vunpack.i.h.bf16 %v2348_v50  ;;  %v2349_v30 = vunpack.i.l.bf16 %v2348_v50 }
  0xbe   : > { %v1159_v54 = vsel %vm1130_vm4, %v1126_v4, %v2314_v32  ;;  %v1160_v16 = vsel %vm1130_vm4, %v1127_v3, %v2315_v9  ;;  %v1462_v57 = vrot.slane %v3093_v31, 1  ;;  %v1464_v56 = vrot.slane %v710_v43, 1 }
  0xbf   : > { %v3079_v17 = vpack.c.bf16 %v1160_v16, %v1159_v54  ;;  %v2323_v28 = vpop.permute.xlu0 %2322 }
  0xc0   : > { %v2325_v36 = vunpack.i.h.bf16 %v2323_v28  ;;  %v2324_v38 = vunpack.i.l.bf16 %v2323_v28  ;;  %v1465_v9 = vsel %vm743_vm1, %v1462_v57, %v1464_v56 }
  0xc2   : > { %2134 = vmatmul.msk.bf16.gmra.mxu1 %vm1218_vm5, %v3022_v51  ;;  %v3090_v51 = vsel %vm566_vm0, 0.0, %v618_v33  ;;  %v1129_v62 = vsel %vm1097_vm3, %v2798_v53, %v2325_v36  ;;  %v1128_v22 = vsel %vm1097_vm3, %v2791_v49, %v2324_v38 }
  0xc3   : > { %v2328_v14 = vpop.permute.xlu1 %2327  ;;  %v1461_v26 = vrot.slane %v3090_v51, 1  ;;  %v1161_v32 = vsel %vm1130_vm4, %v1128_v22, %v2334_v46  ;;  %v1162_v53 = vsel %vm1130_vm4, %v1129_v62, %v2335_v44 }
  0xc4   : > { %v2330_v23 = vunpack.i.h.bf16 %v2328_v14  ;;  %v2329_v3 = vunpack.i.l.bf16 %v2328_v14  ;;  %v3115_v12 = vpack.c.bf16 %v1162_v53, %v1161_v32  ;;  %v1475_v14 = vrot.slane %v710_v43, 2 }
  0xc5   : > { %2125 = vmatmul.msk.bf16.gmra.mxu3 %vm1218_vm5, %v3079_v17  ;;  %2156 = vmatmul.msk.bf16.gmra.mxu2 %vm1218_vm5, %v3083_v27  ;;  %v1463_v4 = vsel %vm743_vm1, %v1461_v26, %v1462_v57  ;;  %v2363_v26 = vpop.permute.xlu2 %2362 }
  0xc6   : > { %v2416_v10 = vpack.i.bf16 %v1465_v9, %v1463_v4  ;;  %v1141_v49 = vsel %vm1130_vm4, %v1108_v6, %v2329_v3  ;;  %v1142_v11 = vsel %vm1130_vm4, %v1109_v5, %v2330_v23  ;;  %v2365_v56 = vunpack.i.h.bf16 %v2363_v26 }
  0xc7   : > { %v2338_v8 = vpop.permute.xlu0 %2337  ;;  %v1168_v48 = vpack.c.bf16 %v1142_v11, %v1141_v49  ;;  %v2364_v62 = vunpack.i.l.bf16 %v2363_v26 }
  0xc8   : > { %2417 = vrot.lane.b32.xlu1 %v2416_v10, %s2538_s19  ;;  %v2340_v13 = vunpack.i.h.bf16 %v2338_v8  ;;  %v2339_v37 = vunpack.i.l.bf16 %v2338_v8  ;;  %v1123_v5 = vsel %vm1097_vm3, %v2886_v60, %v2365_v56  ;;  %s3531_s19 = sshll.u32 %s386_s12, 4  ;;  %s1906_s19 = int_to_ptr.vmem [resolvable:$true] %s3531_s19 }
  0xc9   : > { %v1122_v6 = vsel %vm1097_vm3, %v2892_v20, %v2364_v62 }
  0xca   : > { %2114 = vmatmul.msk.bf16.gmra.mxu0 %vm1218_vm5, %v3051_v39  ;;  %v1111_v33 = vsel %vm1097_vm3, %v2819_v18, %v2340_v13  ;;  %v1110_v36 = vsel %vm1097_vm3, %v2822_v19, %v2339_v37  ;;  %v1473_v18 = vrot.slane %v3093_v31, 2 }
  0xcb   : > { %v2343_v52 = vpop.permute.xlu1 %2342  ;;  %v1143_v41 = vsel %vm1130_vm4, %v1110_v36, %v2349_v30 }
  0xcc   : > { %v2345_v54 = vunpack.i.h.bf16 %v2343_v52  ;;  %v2344_v16 = vunpack.i.l.bf16 %v2343_v52  ;;  %v1476_v46 = vsel %vm920_vm2, %v1473_v18, %v1475_v14 }
  0xce   : > { %v1205_v28 = vsel %vm1097_vm3, %v2840_v35, %v2344_v16  ;;  %v1472_v35 = vrot.slane %v3090_v51, 2 }
  0xcf   : > { %v2353_v7 = vpop.permute.xlu0 %2352 }
  0xd0   : > { %v2355_v42 = vunpack.i.h.bf16 %v2353_v7  ;;  %v2354_v45 = vunpack.i.l.bf16 %v2353_v7  ;;  %v1474_v44 = vsel %vm920_vm2, %v1472_v35, %v1473_v18 }
  0xd1   : > { %v2421_v57 = vpack.i.bf16 %v1476_v46, %v1474_v44 }
  0xd2   : > { %2135 = vmatmul.msk.bf16.gmra.mxu1 %vm1218_vm5, %v3051_v39  ;;  %v1206_v39 = vsel %vm1097_vm3, %v2837_v34, %v2345_v54  ;;  %v1207_v40 = vsel %vm1130_vm4, %v1205_v28, %v2354_v45  ;;  %v1144_v34 = vsel %vm1130_vm4, %v1111_v33, %v2350_v29  ;;  %v2378_v54 = vpop.permute.xlu2 %2377 }
  0xd3   : > { %v2358_v38 = vpop.permute.xlu1 %2357  ;;  %v1208_v0 = vsel %vm1130_vm4, %v1206_v39, %v2355_v42  ;;  %v1169_v19 = vpack.c.bf16 %v1144_v34, %v1143_v41  ;;  %2422 = vrot.lane.b32.xlu2 %v2421_v57, %s2539_s20  ;;  %s3533_s20 = sshll.u32 %s1903_s15, 4  ;;  %s1908_s20 = int_to_ptr.hbm [resolvable:$true] %s3533_s20 }
  0xd4   : > { %v3136_v61 = vpack.c.bf16 %v1208_v0, %v1207_v40  ;;  %v2360_v22 = vunpack.i.h.bf16 %v2358_v38  ;;  %v2359_v23 = vunpack.i.l.bf16 %v2358_v38 }
  0xd5   : > { %2126 = vmatmul.msk.bf16.gmra.mxu3 %vm1218_vm5, %v3115_v12  ;;  %2157 = vmatmul.msk.bf16.gmra.mxu2 %vm1218_vm5, %v1168_v48 }
  0xd6   : > { %v1113_v32 = vsel %vm1097_vm3, %v2866_v21, %v2360_v22  ;;  %v1112_v53 = vsel %vm1097_vm3, %v2869_v24, %v2359_v23  ;;  %v2380_v21 = vunpack.i.h.bf16 %v2378_v54  ;;  %v2379_v24 = vunpack.i.l.bf16 %v2378_v54 }
  0xd7   : > { %v2368_v43 = vpop.permute.xlu0 %2367 }
  0xd8   : > { %v2370_v8 = vunpack.i.h.bf16 %v2368_v43  ;;  %v2369_v9 = vunpack.i.l.bf16 %v2368_v43  ;;  %v1115_v37 = vsel %vm1097_vm3, %v2905_v1, %v2380_v21 }
  0xda   : > { %2115 = vmatmul.msk.bf16.gmra.mxu0 %vm1218_vm5, %v3083_v27  ;;  %v1145_v11 = vsel %vm1130_vm4, %v1112_v53, %v2369_v9  ;;  %v1146_v52 = vsel %vm1130_vm4, %v1113_v32, %v2370_v8  ;;  %v2393_v30 = vpop.permute.xlu2 %2392 }
  0xdb   : > { %v1170_v20 = vpack.c.bf16 %v1146_v52, %v1145_v11  ;;  %v2395_v1 = vunpack.i.h.bf16 %v2393_v30 }
  0xdf   : > { %v2383_v16 = vpop.permute.xlu0 %2382 }
  0xe0   : > { %v2385_v7 = vunpack.i.h.bf16 %v2383_v16  ;;  %v2384_v13 = vunpack.i.l.bf16 %v2383_v16 }
  0xe2   : > { %2136 = vmatmul.msk.bf16.gmra.mxu1 %vm1218_vm5, %v3083_v27  ;;  %v2373_v27 = vpop.permute.xlu1 %2372  ;;  %v1148_v42 = vsel %vm1130_vm4, %v1115_v37, %v2385_v7 }
  0xe3   : > { %v2375_v3 = vunpack.i.h.bf16 %v2373_v27  ;;  %v2374_v4 = vunpack.i.l.bf16 %v2373_v27 }
  0xe5   : > { %2127 = vmatmul.msk.bf16.gmra.mxu3 %vm1218_vm5, %v3136_v61  ;;  %2158 = vmatmul.msk.bf16.gmra.mxu2 %vm1218_vm5, %v1169_v19  ;;  %v1156_v10 = vsel %vm1130_vm4, %v1123_v5, %v2375_v3  ;;  %v1155_v49 = vsel %vm1130_vm4, %v1122_v6, %v2374_v4 }
  0xe6   : > { %v3161_v60 = vpack.c.bf16 %v1156_v10, %v1155_v49 }
  0xe9   : > { %v2398_v41 = vpop.permute.xlu0 %2397 }
  0xea   : > { %2116 = vmatmul.msk.bf16.gmra.mxu0 %vm1218_vm5, %v1168_v48  ;;  %v2388_v39 = vpop.permute.xlu1 %2387  ;;  %v2400_v34 = vunpack.i.h.bf16 %v2398_v41  ;;  %v2399_v35 = vunpack.i.l.bf16 %v2398_v41 }
  0xeb   : > { %v2390_v28 = vunpack.i.h.bf16 %v2388_v39  ;;  %v2389_v29 = vunpack.i.l.bf16 %v2388_v39 }
  0xec   : > { %v1119_v14 = vsel %vm1097_vm3, %v2974_v59, %v2400_v34 }
  0xed   : > { %v1117_v33 = vsel %vm1097_vm3, %v2928_v63, %v2390_v28  ;;  %v1116_v36 = vsel %vm1097_vm3, %v2931_v47, %v2389_v29 }
  0xee   : > { %v1150_v40 = vsel %vm1130_vm4, %v1117_v33, %v2395_v1 }
  0xf1   : > { %v2413_v59 = vpop.permute.xlu0 %2412 }
  0xf2   : > { %2137 = vmatmul.msk.bf16.gmra.mxu1 %vm1218_vm5, %v1168_v48  ;;  %v1114_v48 = vsel %vm1097_vm3, %v2908_v25, %v2379_v24  ;;  %v2394_v25 = vunpack.i.l.bf16 %v2393_v30  ;;  %v2403_v18 = vpop.permute.xlu1 %2402  ;;  %v2415_v4 = vunpack.i.h.bf16 %v2413_v59  ;;  %v2414_v5 = vunpack.i.l.bf16 %v2413_v59 }
  0xf3   : > { %v1147_v50 = vsel %vm1130_vm4, %v1114_v48, %v2384_v13  ;;  %v2405_v63 = vunpack.i.h.bf16 %v2403_v18  ;;  %v2404_v47 = vunpack.i.l.bf16 %v2403_v18 }
  0xf4   : > { %v1171_v45 = vpack.c.bf16 %v1148_v42, %v1147_v50  ;;  %v1149_v38 = vsel %vm1130_vm4, %v1116_v36, %v2394_v25 }
  0xf5   : > { %2144 = vmatmul.msk.bf16.vlgmr.msrb.gmra.mxu3 %vm1218_vm5, %v3161_v60  ;;  %2159 = vmatmul.msk.bf16.gmra.mxu2 %vm1218_vm5, %v1170_v20  ;;  %v1172_v0 = vpack.c.bf16 %v1150_v40, %v1149_v38  ;;  %v1152_v44 = vsel %vm1130_vm4, %v1119_v14, %v2405_v63 }
  0xfa   : > { %2117 = vmatmul.msk.bf16.gmra.mxu0 %vm1218_vm5, %v1169_v19 }
 0x102   : > { %2138 = vmatmul.msk.bf16.gmra.mxu1 %vm1218_vm5, %v1169_v19  ;;  %v1118_v19 = vsel %vm1097_vm3, %v2971_v58, %v2399_v35 }
 0x103   : > { %v1151_v26 = vsel %vm1130_vm4, %v1118_v19, %v2404_v47 }
 0x104   : > { %v3196_v57 = vpack.c.bf16 %v1152_v44, %v1151_v26 }
 0x105   : > { %2145 = vmatmul.msk.bf16.gmra.mxu3 %vm1218_vm5, %v3049_v15  ;;  %2160 = vmatmul.msk.bf16.gmra.mxu2 %vm1218_vm5, %v1171_v45 }
 0x10a   : > { %2118 = vmatmul.msk.bf16.gmra.mxu0 %vm1218_vm5, %v1170_v20  ;;  %v2408_v56 = vpop.permute.xlu2 %2407 }
 0x10b   : > { %v2410_v58 = vunpack.i.h.bf16 %v2408_v56  ;;  %v2409_v22 = vunpack.i.l.bf16 %v2408_v56 }
 0x10d   : > { %v1121_v6 = vsel %vm1097_vm3, %v2998_v2, %v2410_v58  ;;  %v1120_v8 = vsel %vm1097_vm3, %v2995_v55, %v2409_v22 }
 0x10e   : > { %v1153_v32 = vsel %vm1130_vm4, %v1120_v8, %v2414_v5  ;;  %v1154_v53 = vsel %vm1130_vm4, %v1121_v6, %v2415_v4 }
 0x112   : > { %2139 = vmatmul.msk.bf16.gmra.mxu1 %vm1218_vm5, %v1170_v20  ;;  %v3218_v20 = vpack.c.bf16 %v1154_v53, %v1153_v32 }
 0x115   : > { %2146 = vmatmul.msk.bf16.gmra.mxu3 %vm1218_vm5, %v3079_v17  ;;  %2161 = vmatmul.msk.bf16.gmra.mxu2 %vm1218_vm5, %v1172_v0 }
 0x11a   : > { %2119 = vmatmul.msk.bf16.gmra.mxu0 %vm1218_vm5, %v1171_v45 }
 0x11f   : > { %v1379_v46 = vpop.f32.mrf.mxu1 }
 0x122   : > { %2140 = vmatmul.msk.bf16.gmra.mxu1 %vm1218_vm5, %v1171_v45 }
 0x125   : > { %2147 = vmatmul.msk.bf16.gmra.mxu3 %vm1218_vm5, %v3115_v12  ;;  %2162 = vmatmul.msk.bf16.gmra.mxu2 %vm1218_vm5, %v3196_v57 }
 0x127   : > { %v1279_v62 = vpop.f32.mrf.mxu0  ;;  %v1381_v27 = vpop.f32.mrf.mxu1 }
 0x128   : > { %v1380_v23 = vadd.f32 %v1379_v46, %v1279_v62  ;;  %v1511_v43 = vpop.f32.mrf.mxu2 }
 0x12a   : > { %2120 = vmatmul.msk.bf16.gmra.mxu0 %vm1218_vm5, %v1172_v0  ;;  %v1591_v3 = vadd.f32 %v1511_v43, %v1380_v23 }
 0x12c   : > { %v1623_v9 = vpack.c.bf16 %v1591_v3, %v1591_v3  ;;  %v1759_v54 = vmul.f32 %v1591_v3, %v1591_v3  ;;  %v1688_v55 = vsel %vm1097_vm3, %v1591_v3, 0.0 }
 0x12e   : > { %1656 = vst.msk [vmem:[%s3208_s16] sm:$0xf] %vm1655_vm6, %v1623_v9  ;;  %v1791_v13 = vsel %vm1097_vm3, %v1759_v54, 0.0  ;;  %v2423_v54 = vpop.permute.xlu2 %2422 }
 0x12f   : > { %v1281_v10 = vpop.f32.mrf.mxu0  ;;  %v1384_v49 = vpop.f32.mrf.mxu1 }
 0x130   : > { %v1382_v11 = vadd.f32 %v1381_v27, %v1281_v10  ;;  %v1513_v52 = vpop.f32.mrf.mxu2 }
 0x132   : > { %2141 = vmatmul.msk.bf16.gmra.mxu1 %vm1218_vm5, %v1172_v0  ;;  %v1592_v2 = vadd.f32 %v1513_v52, %v1382_v11 }
 0x134   : > { %v1624_v21 = vpack.c.bf16 %v1592_v2, %v1592_v2  ;;  %v1689_v24 = vsel %vm1097_vm3, %v1592_v2, 0.0  ;;  %v1760_v16 = vmul.f32 %v1592_v2, %v1592_v2 }
 0x135   : > { %v1690_v7 = vadd.f32 %v1689_v24, %v1688_v55  ;;  %2163 = vmatmul.msk.bf16.gmra.mxu2 %vm1218_vm5, %v3218_v20  ;;  %2166 = vmatmul.msk.bf16.vlgmr.msra.gmra.mxu3 %vm1218_vm5, %v3079_v17 }
 0x136   : > { %1657 = vst.msk [vmem:[%s3208_s16 + $0x4] sm:$0xf] %vm1655_vm6, %v1624_v21  ;;  %v1792_v37 = vsel %vm1097_vm3, %v1760_v16, 0.0 }
 0x137   : > { %v1793_v48 = vadd.f32 %v1792_v37, %v1791_v13  ;;  %v1284_v50 = vpop.f32.mrf.mxu0  ;;  %v1386_v42 = vpop.f32.mrf.mxu1  ;;  %v2424_v37 = vunpack.i.l.bf16 %v2423_v54 }
 0x138   : > { %v1385_v45 = vadd.f32 %v1384_v49, %v1284_v50  ;;  %v3231_v39 = vpop.f32.mrf.mxu3  ;;  %v1516_v28 = vpop.f32.mrf.mxu2 }
 0x13a   : > { %2121 = vmatmul.msk.bf16.gmra.mxu0 %vm1218_vm5, %v3196_v57  ;;  %v1593_v29 = vadd.f32 %v1516_v28, %v1385_v45  ;;  %v2418_v49 = vpop.permute.xlu1 %2417 }
 0x13b   : > { %v2420_v21 = vunpack.i.h.bf16 %v2418_v49  ;;  %v2419_v24 = vunpack.i.l.bf16 %v2418_v49 }
 0x13c   : > { %v1625_v30 = vpack.c.bf16 %v1593_v29, %v1593_v29  ;;  %v1691_v17 = vsel %vm1097_vm3, %v1593_v29, 0.0  ;;  %v1761_v1 = vmul.f32 %v1593_v29, %v1593_v29 }
 0x13d   : > { %v1692_v25 = vadd.f32 %v1691_v17, %v1690_v7  ;;  %v1483_v50 = vsel %vm1097_vm3, %v3090_v51, %v2419_v24 }
 0x13e   : > { %1658 = vst.msk [vmem:[%s3208_s16 + $0x8] sm:$0xf] %vm1655_vm6, %v1625_v30  ;;  %v1794_v33 = vsel %vm1097_vm3, %v1761_v1, 0.0 }
 0x13f   : > { %v1795_v36 = vadd.f32 %v1794_v33, %v1793_v48  ;;  %v1286_v38 = vpop.f32.mrf.mxu0  ;;  %v1389_v40 = vpop.f32.mrf.mxu1  ;;  %v1484_v48 = vsel %vm1097_vm3, %v3093_v31, %v2420_v21 }
 0x140   : > { %v1387_v0 = vadd.f32 %v1386_v42, %v1286_v38  ;;  %v3239_v41 = vpop.f32.mrf.mxu3  ;;  %v1518_v34 = vpop.f32.mrf.mxu2 }
 0x142   : > { %2142 = vmatmul.msk.bf16.gmra.mxu1 %vm1218_vm5, %v3196_v57  ;;  %v1594_v35 = vadd.f32 %v1518_v34, %v1387_v0 }
 0x144   : > { %v1626_v18 = vpack.c.bf16 %v1594_v35, %v1594_v35  ;;  %v1693_v63 = vsel %vm1097_vm3, %v1594_v35, 0.0  ;;  %v1762_v47 = vmul.f32 %v1594_v35, %v1594_v35 }
 0x145   : > { %v1694_v14 = vadd.f32 %v1693_v63, %v1692_v25  ;;  %2164 = vmatmul.msk.bf16.gmra.mxu2 %vm1218_vm5, %v3161_v60  ;;  %2167 = vmatmul.msk.bf16.gmra.mxu3 %vm1218_vm5, %v3115_v12 }
 0x146   : > { %1659 = vst.msk [vmem:[%s3208_s16 + $0xc] sm:$0xf] %vm1655_vm6, %v1626_v18  ;;  %v1796_v19 = vsel %vm1097_vm3, %v1762_v47, 0.0 }
 0x147   : > { %v1797_v26 = vadd.f32 %v1796_v19, %v1795_v36  ;;  %v1289_v44 = vpop.f32.mrf.mxu0  ;;  %v1391_v46 = vpop.f32.mrf.mxu1 }
 0x148   : > { %v1390_v57 = vadd.f32 %v1389_v40, %v1289_v44  ;;  %v3251_v56 = vpop.f32.mrf.mxu3  ;;  %v1521_v59 = vpop.f32.mrf.mxu2 }
 0x14a   : > { %2122 = vmatmul.msk.bf16.gmra.mxu0 %vm1218_vm5, %v3218_v20  ;;  %v1595_v62 = vadd.f32 %v1521_v59, %v1390_v57 }
 0x14c   : > { %v1627_v27 = vpack.c.bf16 %v1595_v62, %v1595_v62  ;;  %v1695_v58 = vsel %vm1097_vm3, %v1595_v62, 0.0  ;;  %v1763_v22 = vmul.f32 %v1595_v62, %v1595_v62 }
 0x14d   : > { %v1696_v12 = vadd.f32 %v1695_v58, %v1694_v14 }
 0x14e   : > { %1660 = vst.msk [vmem:[%s3208_s16 + $0x10] sm:$0xf] %vm1655_vm6, %v1627_v27  ;;  %v1798_v23 = vsel %vm1097_vm3, %v1763_v22, 0.0 }
 0x14f   : > { %v1799_v43 = vadd.f32 %v1798_v23, %v1797_v26  ;;  %v1291_v3 = vpop.f32.mrf.mxu0  ;;  %v1394_v4 = vpop.f32.mrf.mxu1 }
 0x150   : > { %v1392_v5 = vadd.f32 %v1391_v46, %v1291_v3  ;;  %v3259_v6 = vpop.f32.mrf.mxu3  ;;  %v1523_v8 = vpop.f32.mrf.mxu2 }
 0x152   : > { %2143 = vmatmul.msk.bf16.gmra.mxu1 %vm1218_vm5, %v3218_v20  ;;  %v1596_v9 = vadd.f32 %v1523_v8, %v1392_v5 }
 0x154   : > { %v1628_v32 = vpack.c.bf16 %v1596_v9, %v1596_v9  ;;  %v1697_v53 = vsel %vm1097_vm3, %v1596_v9, 0.0  ;;  %v1764_v10 = vmul.f32 %v1596_v9, %v1596_v9 }
 0x155   : > { %v1698_v11 = vadd.f32 %v1697_v53, %v1696_v12  ;;  %2165 = vmatmul.msk.bf16.gmra.mxu2 %vm1218_vm5, %v3049_v15  ;;  %2168 = vmatmul.msk.bf16.gmra.mxu3 %vm1218_vm5, %v3136_v61  ;;  %v2425_v61 = vunpack.i.h.bf16 %v2423_v54 }
 0x156   : > { %1661 = vst.msk [vmem:[%s3208_s16 + $0x14] sm:$0xf] %vm1655_vm6, %v1628_v32  ;;  %v1800_v52 = vsel %vm1097_vm3, %v1764_v10, 0.0 }
 0x157   : > { %v1801_v2 = vadd.f32 %v1800_v52, %v1799_v43  ;;  %v1294_v20 = vpop.f32.mrf.mxu0  ;;  %v1396_v55 = vpop.f32.mrf.mxu1  ;;  %v1486_v17 = vsel %vm1130_vm4, %v1484_v48, %v2425_v61 }
 0x158   : > { %v1395_v16 = vadd.f32 %v1394_v4, %v1294_v20  ;;  %v3271_v7 = vpop.f32.mrf.mxu3  ;;  %v1526_v13 = vpop.f32.mrf.mxu2 }
 0x15a   : > { %2123 = vmatmul.msk.bf16.gmra.mxu0 %vm1218_vm5, %v3161_v60  ;;  %v1597_v15 = vadd.f32 %v1526_v13, %v1395_v16  ;;  %v1485_v60 = vsel %vm1130_vm4, %v1483_v50, %v2424_v37 }
 0x15b   : > { %v1487_v38 = vpack.c.bf16 %v1486_v17, %v1485_v60 }
 0x15c   : > { %v1629_v42 = vpack.c.bf16 %v1597_v15, %v1597_v15  ;;  %v1699_v45 = vsel %vm1097_vm3, %v1597_v15, 0.0  ;;  %v1765_v28 = vmul.f32 %v1597_v15, %v1597_v15 }
 0x15d   : > { %v1700_v29 = vadd.f32 %v1699_v45, %v1698_v11 }
 0x15e   : > { %1662 = vst.msk [vmem:[%s3208_s16 + $0x18] sm:$0xf] %vm1655_vm6, %v1629_v42  ;;  %v1802_v30 = vsel %vm1097_vm3, %v1765_v28, 0.0 }
 0x15f   : > { %v1803_v1 = vadd.f32 %v1802_v30, %v1801_v2  ;;  %v1296_v25 = vpop.f32.mrf.mxu0  ;;  %v1399_v31 = vpop.f32.mrf.mxu1 }
 0x160   : > { %v1397_v33 = vadd.f32 %v1396_v55, %v1296_v25  ;;  %v3285_v36 = vpop.f32.mrf.mxu3  ;;  %v1528_v51 = vpop.f32.mrf.mxu2 }
 0x162   : > { %v1598_v40 = vadd.f32 %v1528_v51, %v1397_v33 }
 0x164   : > { %v1630_v0 = vpack.c.bf16 %v1598_v40, %v1598_v40  ;;  %v1701_v34 = vsel %vm1097_vm3, %v1598_v40, 0.0  ;;  %v1766_v35 = vmul.f32 %v1598_v40, %v1598_v40 }
 0x165   : > { %v1702_v18 = vadd.f32 %v1701_v34, %v1700_v29  ;;  %2169 = vmatmul.msk.bf16.gmra.mxu3 %vm1218_vm5, %v1487_v38 }
 0x166   : > { %1663 = vst.msk [vmem:[%s3208_s16 + $0x1c] sm:$0xf] %vm1655_vm6, %v1630_v0  ;;  %v1804_v63 = vsel %vm1097_vm3, %v1766_v35, 0.0 }
 0x167   : > { %v1805_v47 = vadd.f32 %v1804_v63, %v1803_v1  ;;  %v1299_v14 = vpop.f32.mrf.mxu0  ;;  %v1401_v19 = vpop.f32.mrf.mxu1 }
 0x168   : > { %v1400_v26 = vadd.f32 %v1399_v31, %v1299_v14  ;;  %v3292_v44 = vpop.f32.mrf.mxu3  ;;  %v1531_v46 = vpop.f32.mrf.mxu2 }
 0x16a   : > { %v1599_v57 = vadd.f32 %v1531_v46, %v1400_v26 }
 0x16c   : > { %v1631_v59 = vpack.c.bf16 %v1599_v57, %v1599_v57  ;;  %v1703_v62 = vsel %vm1097_vm3, %v1599_v57, 0.0  ;;  %v1767_v27 = vmul.f32 %v1599_v57, %v1599_v57 }
 0x16d   : > { %v1704_v58 = vadd.f32 %v1703_v62, %v1702_v18 }
 0x16e   : > { %1664 = vst.msk [vmem:[%s3208_s16 + $0x20] sm:$0xf] %vm1655_vm6, %v1631_v59  ;;  %v1806_v22 = vsel %vm1097_vm3, %v1767_v27, 0.0 }
 0x16f   : > { %v1807_v12 = vadd.f32 %v1806_v22, %v1805_v47  ;;  %v1301_v23 = vpop.f32.mrf.mxu0  ;;  %v1404_v43 = vpop.f32.mrf.mxu1 }
 0x170   : > { %v1402_v3 = vadd.f32 %v1401_v19, %v1301_v23  ;;  %v3298_v4 = vpop.f32.mrf.mxu3  ;;  %v1533_v5 = vpop.f32.mrf.mxu2 }
 0x172   : > { %v1600_v8 = vadd.f32 %v1533_v5, %v1402_v3 }
 0x174   : > { %v1632_v9 = vpack.c.bf16 %v1600_v8, %v1600_v8  ;;  %v1705_v32 = vsel %vm1097_vm3, %v1600_v8, 0.0  ;;  %v1768_v53 = vmul.f32 %v1600_v8, %v1600_v8 }
 0x175   : > { %v1706_v10 = vadd.f32 %v1705_v32, %v1704_v58 }
 0x176   : > { %1665 = vst.msk [vmem:[%s3208_s16 + $0x24] sm:$0xf] %vm1655_vm6, %v1632_v9  ;;  %v1808_v49 = vsel %vm1097_vm3, %v1768_v53, 0.0 }
 0x177   : > { %v1809_v11 = vadd.f32 %v1808_v49, %v1807_v12  ;;  %v1304_v52 = vpop.f32.mrf.mxu0  ;;  %v1406_v54 = vpop.f32.mrf.mxu1 }
 0x178   : > { %v1405_v2 = vadd.f32 %v1404_v43, %v1304_v52  ;;  %v3304_v20 = vpop.f32.mrf.mxu3  ;;  %v1536_v55 = vpop.f32.mrf.mxu2 }
 0x17a   : > { %v1601_v21 = vadd.f32 %v1536_v55, %v1405_v2 }
 0x17c   : > { %v1633_v24 = vpack.c.bf16 %v1601_v21, %v1601_v21  ;;  %v1707_v16 = vsel %vm1097_vm3, %v1601_v21, 0.0  ;;  %v1769_v13 = vmul.f32 %v1601_v21, %v1601_v21 }
 0x17d   : > { %v1708_v15 = vadd.f32 %v1707_v16, %v1706_v10 }
 0x17e   : > { %1666 = vst.msk [vmem:[%s3208_s16 + $0x28] sm:$0xf] %vm1655_vm6, %v1633_v24  ;;  %v1810_v61 = vsel %vm1097_vm3, %v1769_v13, 0.0 }
 0x17f   : > { %v1811_v37 = vadd.f32 %v1810_v61, %v1809_v11  ;;  %v1306_v48 = vpop.f32.mrf.mxu0  ;;  %v1409_v50 = vpop.f32.mrf.mxu1 }
 0x180   : > { %v1407_v42 = vadd.f32 %v1406_v54, %v1306_v48  ;;  %v3310_v45 = vpop.f32.mrf.mxu3  ;;  %v1538_v28 = vpop.f32.mrf.mxu2 }
 0x182   : > { %v1602_v29 = vadd.f32 %v1538_v28, %v1407_v42 }
 0x184   : > { %v1634_v30 = vpack.c.bf16 %v1602_v29, %v1602_v29  ;;  %v1709_v60 = vsel %vm1097_vm3, %v1602_v29, 0.0  ;;  %v1770_v17 = vmul.f32 %v1602_v29, %v1602_v29  ;;  %v1440_v29 = vadd.f32 %v3304_v20, %v3231_v39 }
 0x185   : > { %v1710_v1 = vadd.f32 %v1709_v60, %v1708_v15  ;;  %v1442_v39 = vadd.f32 %v3310_v45, %v3239_v41 }
 0x186   : > { %1667 = vst.msk [vmem:[%s3208_s16 + $0x2c] sm:$0xf] %vm1655_vm6, %v1634_v30  ;;  %v1812_v25 = vsel %vm1097_vm3, %v1770_v17, 0.0 }
 0x187   : > { %v1813_v31 = vadd.f32 %v1812_v25, %v1811_v37  ;;  %v1309_v33 = vpop.f32.mrf.mxu0  ;;  %v1411_v51 = vpop.f32.mrf.mxu1 }
 0x188   : > { %v1410_v38 = vadd.f32 %v1409_v50, %v1309_v33  ;;  %v3316_v40 = vpop.f32.mrf.mxu3  ;;  %v1541_v0 = vpop.f32.mrf.mxu2 }
 0x189   : > { %v1445_v41 = vadd.f32 %v3316_v40, %v3251_v56 }
 0x18a   : > { %v1603_v34 = vadd.f32 %v1541_v0, %v1410_v38 }
 0x18c   : > { %v1635_v35 = vpack.c.bf16 %v1603_v34, %v1603_v34  ;;  %v1711_v18 = vsel %vm1097_vm3, %v1603_v34, 0.0  ;;  %v1771_v63 = vmul.f32 %v1603_v34, %v1603_v34 }
 0x18d   : > { %v3319_v47 = vadd.f32 %v1711_v18, %v1710_v1 }
 0x18e   : > { %1668 = vst.msk [vmem:[%s3208_s16 + $0x30] sm:$0xf] %vm1655_vm6, %v1635_v35  ;;  %v1814_v14 = vsel %vm1097_vm3, %v1771_v63, 0.0 }
 0x18f   : > { %v3324_v19 = vadd.f32 %v1814_v14, %v1813_v31  ;;  %v1311_v26 = vpop.f32.mrf.mxu0  ;;  %v1414_v46 = vpop.f32.mrf.mxu1 }
 0x190   : > { %v1412_v57 = vadd.f32 %v1411_v51, %v1311_v26  ;;  %v3326_v59 = vpop.f32.mrf.mxu3  ;;  %v1543_v62 = vpop.f32.mrf.mxu2 }
 0x192   : > { %v3328_v27 = vadd.f32 %v1543_v62, %v1412_v57 }
 0x194   : > { %v1636_v58 = vpack.c.bf16 %v3328_v27, %v3328_v27  ;;  %v1713_v56 = vsel %vm1097_vm3, %v3328_v27, 0.0 }
 0x196   : > { %1669 = vst.msk [vmem:[%s3208_s16 + $0x34] sm:$0xf] %vm1655_vm6, %v1636_v58 }
 0x197   : > { %v1314_v22 = vpop.f32.mrf.mxu0  ;;  %v1416_v12 = vpop.f32.mrf.mxu1 }
 0x198   : > { %v1415_v23 = vadd.f32 %v1414_v46, %v1314_v22  ;;  %v3334_v43 = vpop.f32.mrf.mxu3  ;;  %v1546_v3 = vpop.f32.mrf.mxu2 }
 0x19a   : > { %v3336_v5 = vadd.f32 %v1546_v3, %v1415_v23 }
 0x19c   : > { %v1637_v8 = vpack.c.bf16 %v3336_v5, %v3336_v5  ;;  %v1773_v40 = vmul.f32 %v3336_v5, %v3336_v5 }
 0x19e   : > { %1670 = vst.msk [vmem:[%s3208_s16 + $0x38] sm:$0xf] %vm1655_vm6, %v1637_v8  ;;  %v1772_v8 = vmul.f32 %v3328_v27, %v3328_v27 }
 0x19f   : > { %v1316_v9 = vpop.f32.mrf.mxu0  ;;  %v1419_v32 = vpop.f32.mrf.mxu1 }
 0x1a0   : > { %v1417_v53 = vadd.f32 %v1416_v12, %v1316_v9  ;;  %v3342_v10 = vpop.f32.mrf.mxu3  ;;  %v1548_v49 = vpop.f32.mrf.mxu2 }
 0x1a2   : > { %v3344_v11 = vadd.f32 %v1548_v49, %v1417_v53  ;;  %v1816_v49 = vsel %vm1097_vm3, %v1772_v8, 0.0 }
 0x1a4   : > { %v1638_v52 = vpack.c.bf16 %v3344_v11, %v3344_v11 }
 0x1a6   : > { %1671 = vst.msk [vmem:[%s3208_s16 + $0x3c] sm:$0xf] %vm1655_vm6, %v1638_v52  ;;  %v1715_v52 = vsel %vm1097_vm3, %v3336_v5, 0.0 }
 0x1a7   : > { %v1319_v54 = vpop.f32.mrf.mxu0  ;;  %v1421_v2 = vpop.f32.mrf.mxu1 }
 0x1a8   : > { %v1420_v55 = vadd.f32 %v1419_v32, %v1319_v54  ;;  %v3350_v21 = vpop.f32.mrf.mxu3  ;;  %v1551_v24 = vpop.f32.mrf.mxu2  ;;  %v1447_v32 = vadd.f32 %v3326_v59, %v3259_v6  ;;  %v1774_v54 = vmul.f32 %v3344_v11, %v3344_v11  ;;  %v1717_v6 = vsel %vm1097_vm3, %v3344_v11, 0.0 }
 0x1aa   : > { %v3352_v16 = vadd.f32 %v1551_v24, %v1420_v55  ;;  %v1714_v24 = vadd.f32 %v1713_v56, %v3319_v47  ;;  %v1820_v47 = vsel %vm1097_vm3, %v1774_v54, 0.0 }
 0x1ac   : > { %v1639_v13 = vpack.c.bf16 %v3352_v16, %v3352_v16  ;;  %v1775_v59 = vmul.f32 %v3352_v16, %v3352_v16 }
 0x1ae   : > { %1672 = vst.msk [vmem:[%s3208_s16 + $0x40] sm:$0xf] %vm1655_vm6, %v1639_v13 }
 0x1af   : > { %v1321_v15 = vpop.f32.mrf.mxu0  ;;  %v1424_v61 = vpop.f32.mrf.mxu1 }
 0x1b0   : > { %v1422_v37 = vadd.f32 %v1421_v2, %v1321_v15  ;;  %v3358_v48 = vpop.f32.mrf.mxu3  ;;  %v1553_v50 = vpop.f32.mrf.mxu2  ;;  %v1818_v15 = vsel %vm1097_vm3, %v1773_v40, 0.0 }
 0x1b2   : > { %v3360_v42 = vadd.f32 %v1553_v50, %v1422_v37  ;;  %v1716_v37 = vadd.f32 %v1715_v52, %v1714_v24 }
 0x1b4   : > { %v1640_v28 = vpack.c.bf16 %v3360_v42, %v3360_v42 }
 0x1b6   : > { %1673 = vst.msk [vmem:[%s3208_s16 + $0x44] sm:$0xf] %vm1655_vm6, %v1640_v28  ;;  %v1719_v28 = vsel %vm1097_vm3, %v3352_v16, 0.0  ;;  %v1450_v16 = vadd.f32 %v3334_v43, %v3271_v7 }
 0x1b7   : > { %v1324_v30 = vpop.f32.mrf.mxu0  ;;  %v1426_v60 = vpop.f32.mrf.mxu1 }
 0x1b8   : > { %v1425_v17 = vadd.f32 %v1424_v61, %v1324_v30  ;;  %v1556_v1 = vpop.f32.mrf.mxu2  ;;  %v1571_v25 = vpop.f32.mrf.mxu3  ;;  %v1817_v61 = vadd.f32 %v1816_v49, %v3324_v19  ;;  %v1822_v19 = vsel %vm1097_vm3, %v1775_v59, 0.0  ;;  %v1452_v49 = vadd.f32 %v3342_v10, %v3285_v36 }
 0x1b9   : > { %v3368_v31 = vadd.f32 %v1571_v25, %v1440_v29  ;;  %v1776_v29 = vmul.f32 %v3360_v42, %v3360_v42 }
 0x1ba   : > { %v3370_v33 = vadd.f32 %v1556_v1, %v1425_v17  ;;  %v1819_v30 = vadd.f32 %v1818_v15, %v1817_v61  ;;  %v1721_v1 = vsel %vm1097_vm3, %v3360_v42, 0.0 }
 0x1bb   : > { %v1647_v51 = vpack.c.bf16 %v3368_v31, %v3368_v31 }
 0x1bc   : > { %v1641_v38 = vpack.c.bf16 %v3370_v33, %v3370_v33  ;;  %v1777_v25 = vmul.f32 %v3370_v33, %v3370_v33 }
 0x1bd   : > { %1680 = vst.msk [vmem:[%s3208_s16 + $0x60] sm:$0xf] %vm1655_vm6, %v1647_v51  ;;  %v1821_v51 = vadd.f32 %v1820_v47, %v1819_v30 }
 0x1be   : > { %1674 = vst.msk [vmem:[%s3208_s16 + $0x48] sm:$0xf] %vm1655_vm6, %v1641_v38  ;;  %v1826_v7 = vsel %vm1097_vm3, %v1777_v25, 0.0 }
 0x1bf   : > { %v1326_v20 = vpop.f32.mrf.mxu0  ;;  %v1429_v18 = vpop.f32.mrf.mxu1 }
 0x1c0   : > { %v1427_v0 = vadd.f32 %v1426_v60, %v1326_v20  ;;  %v1558_v34 = vpop.f32.mrf.mxu2  ;;  %v1573_v35 = vpop.f32.mrf.mxu3  ;;  %v1718_v60 = vadd.f32 %v1717_v6, %v1716_v37  ;;  %v1824_v20 = vsel %vm1097_vm3, %v1776_v29, 0.0 }
 0x1c1   : > { %v3382_v63 = vadd.f32 %v1573_v35, %v1442_v39 }
 0x1c2   : > { %v3384_v14 = vadd.f32 %v1558_v34, %v1427_v0  ;;  %v1720_v38 = vadd.f32 %v1719_v28, %v1718_v60  ;;  %v1723_v0 = vsel %vm1097_vm3, %v3370_v33, 0.0  ;;  %v1783_v28 = vmul.f32 %v3368_v31, %v3368_v31 }
 0x1c3   : > { %v1648_v26 = vpack.c.bf16 %v3382_v63, %v3382_v63 }
 0x1c4   : > { %v1642_v46 = vpack.c.bf16 %v3384_v14, %v3384_v14  ;;  %v1778_v34 = vmul.f32 %v3384_v14, %v3384_v14  ;;  %v1725_v43 = vsel %vm1097_vm3, %v3384_v14, 0.0 }
 0x1c5   : > { %1681 = vst.msk [vmem:[%s3208_s16 + $0x64] sm:$0xf] %vm1655_vm6, %v1648_v26  ;;  %v1823_v26 = vadd.f32 %v1822_v19, %v1821_v51  ;;  %v1735_v19 = vsel %vm1097_vm3, %v3368_v31, 0.0 }
 0x1c6   : > { %1675 = vst.msk [vmem:[%s3208_s16 + $0x4c] sm:$0xf] %vm1655_vm6, %v1642_v46  ;;  %v1722_v46 = vadd.f32 %v1721_v1, %v1720_v38  ;;  %v1784_v1 = vmul.f32 %v3382_v63, %v3382_v63 }
 0x1c7   : > { %v1329_v45 = vpop.f32.mrf.mxu0  ;;  %v1431_v23 = vpop.f32.mrf.mxu1  ;;  %v1825_v33 = vadd.f32 %v1824_v20, %v1823_v26  ;;  %v1737_v20 = vsel %vm1097_vm3, %v3382_v63, 0.0 }
 0x1c8   : > { %v1430_v57 = vadd.f32 %v1429_v18, %v1329_v45  ;;  %v1561_v62 = vpop.f32.mrf.mxu2  ;;  %v1576_v58 = vpop.f32.mrf.mxu3 }
 0x1c9   : > { %v3396_v22 = vadd.f32 %v1576_v58, %v1445_v41  ;;  %v1827_v56 = vadd.f32 %v1826_v7, %v1825_v33 }
 0x1ca   : > { %v1611_v12 = vadd.f32 %v1561_v62, %v1430_v57  ;;  %v1724_v62 = vadd.f32 %v1723_v0, %v1722_v46 }
 0x1cb   : > { %v1649_v3 = vpack.c.bf16 %v3396_v22, %v3396_v22  ;;  %v1785_v31 = vmul.f32 %v3396_v22, %v3396_v22 }
 0x1cc   : > { %v1643_v9 = vpack.c.bf16 %v1611_v12, %v1611_v12  ;;  %v1779_v45 = vmul.f32 %v1611_v12, %v1611_v12  ;;  %v1726_v40 = vadd.f32 %v1725_v43, %v1724_v62 }
 0x1cd   : > { %1682 = vst.msk [vmem:[%s3208_s16 + $0x68] sm:$0xf] %vm1655_vm6, %v1649_v3  ;;  %v1727_v3 = vsel %vm1097_vm3, %v1611_v12, 0.0  ;;  %v1842_v63 = vsel %vm1097_vm3, %v1785_v31, 0.0 }
 0x1ce   : > { %1676 = vst.msk [vmem:[%s3208_s16 + $0x50] sm:$0xf] %vm1655_vm6, %v1643_v9  ;;  %v1728_v54 = vadd.f32 %v1727_v3, %v1726_v40 }
 0x1cf   : > { %v1331_v53 = vpop.f32.mrf.mxu0  ;;  %v1434_v17 = vpop.f32.mrf.mxu1 }
 0x1d0   : > { %v1432_v2 = vadd.f32 %v1431_v23, %v1331_v53  ;;  %v1563_v55 = vpop.f32.mrf.mxu2  ;;  %v1578_v27 = vpop.f32.mrf.mxu3  ;;  %v1828_v23 = vsel %vm1097_vm3, %v1778_v34, 0.0 }
 0x1d1   : > { %v3418_v13 = vadd.f32 %v1578_v27, %v1447_v32  ;;  %v1830_v32 = vsel %vm1097_vm3, %v1779_v45, 0.0  ;;  %v1829_v52 = vadd.f32 %v1828_v23, %v1827_v56  ;;  %v1457_v23 = vadd.f32 %v3358_v48, %v3298_v4 }
 0x1d2   : > { %v1612_v5 = vadd.f32 %v1563_v55, %v1432_v2 }
 0x1d3   : > { %v1650_v50 = vpack.c.bf16 %v3418_v13, %v3418_v13  ;;  %v1831_v59 = vadd.f32 %v1830_v32, %v1829_v52  ;;  %v1741_v43 = vsel %vm1097_vm3, %v3418_v13, 0.0 }
 0x1d4   : > { %v1644_v11 = vpack.c.bf16 %v1612_v5, %v1612_v5  ;;  %v1780_v8 = vmul.f32 %v1612_v5, %v1612_v5  ;;  %v1729_v14 = vsel %vm1097_vm3, %v1612_v5, 0.0 }
 0x1d5   : > { %1683 = vst.msk [vmem:[%s3208_s16 + $0x6c] sm:$0xf] %vm1655_vm6, %v1650_v50  ;;  %v1730_v5 = vadd.f32 %v1729_v14, %v1728_v54 }
 0x1d6   : > { %1677 = vst.msk [vmem:[%s3208_s16 + $0x54] sm:$0xf] %vm1655_vm6, %v1644_v11  ;;  %v1832_v55 = vsel %vm1097_vm3, %v1780_v8, 0.0 }
 0x1d7   : > { %v1334_v39 = vpop.f32.mrf.mxu0  ;;  %v1436_v2 = vpop.f32.mrf.mxu1  ;;  %v1833_v36 = vadd.f32 %v1832_v55, %v1831_v59 }
 0x1d8   : > { %v1435_v42 = vadd.f32 %v1434_v17, %v1334_v39  ;;  %v1566_v35 = vpop.f32.mrf.mxu2  ;;  %v1581_v18 = vpop.f32.mrf.mxu3  ;;  %v1838_v39 = vsel %vm1097_vm3, %v1783_v28, 0.0 }
 0x1d9   : > { %v3449_v41 = vadd.f32 %v1581_v18, %v1450_v16  ;;  %v1455_v16 = vadd.f32 %v3350_v21, %v3292_v44  ;;  %v1840_v18 = vsel %vm1097_vm3, %v1784_v1, 0.0  ;;  %v1739_v44 = vsel %vm1097_vm3, %v3396_v22, 0.0 }
 0x1da   : > { %v1613_v57 = vadd.f32 %v1566_v35, %v1435_v42  ;;  %v1786_v21 = vmul.f32 %v3418_v13, %v3418_v13 }
 0x1db   : > { %v1651_v58 = vpack.c.bf16 %v3449_v41, %v3449_v41  ;;  %v1787_v45 = vmul.f32 %v3449_v41, %v3449_v41  ;;  %v1743_v62 = vsel %vm1097_vm3, %v3449_v41, 0.0 }
 0x1dc   : > { %v1645_v9 = vpack.c.bf16 %v1613_v57, %v1613_v57  ;;  %v1781_v53 = vmul.f32 %v1613_v57, %v1613_v57  ;;  %v1731_v27 = vsel %vm1097_vm3, %v1613_v57, 0.0  ;;  %v1844_v22 = vsel %vm1097_vm3, %v1786_v21, 0.0 }
 0x1dd   : > { %1684 = vst.msk [vmem:[%s3208_s16 + $0x70] sm:$0xf] %vm1655_vm6, %v1651_v58  ;;  %v1732_v10 = vadd.f32 %v1731_v27, %v1730_v5  ;;  %v1846_v13 = vsel %vm1097_vm3, %v1787_v45, 0.0 }
 0x1de   : > { %1678 = vst.msk [vmem:[%s3208_s16 + $0x58] sm:$0xf] %vm1655_vm6, %v1645_v9  ;;  %v1834_v37 = vsel %vm1097_vm3, %v1781_v53, 0.0 }
 0x1df   : > { %v1336_v12 = vpop.f32.mrf.mxu0  ;;  %v1835_v60 = vadd.f32 %v1834_v37, %v1833_v36 }
 0x1e0   : > { %v1437_v24 = vadd.f32 %v1436_v2, %v1336_v12  ;;  %v1568_v15 = vpop.f32.mrf.mxu2  ;;  %v1583_v6 = vpop.f32.mrf.mxu3 }
 0x1e1   : > { %v1620_v61 = vadd.f32 %v1583_v6, %v1452_v49 }
 0x1e2   : > { %v1614_v50 = vadd.f32 %v1568_v15, %v1437_v24 }
 0x1e3   : > { %v1652_v47 = vpack.c.bf16 %v1620_v61, %v1620_v61  ;;  %v1788_v58 = vmul.f32 %v1620_v61, %v1620_v61  ;;  %v1745_v9 = vsel %vm1097_vm3, %v1620_v61, 0.0 }
 0x1e4   : > { %v1646_v29 = vpack.c.bf16 %v1614_v50, %v1614_v50  ;;  %v1733_v11 = vsel %vm1097_vm3, %v1614_v50, 0.0  ;;  %v1782_v30 = vmul.f32 %v1614_v50, %v1614_v50 }
 0x1e5   : > { %v1734_v17 = vadd.f32 %v1733_v11, %v1732_v10  ;;  %1685 = vst.msk [vmem:[%s3208_s16 + $0x74] sm:$0xf] %vm1655_vm6, %v1652_v47  ;;  %v1848_v49 = vsel %vm1097_vm3, %v1788_v58, 0.0 }
 0x1e6   : > { %1679 = vst.msk [vmem:[%s3208_s16 + $0x5c] sm:$0xf] %vm1655_vm6, %v1646_v29  ;;  %v1836_v25 = vsel %vm1097_vm3, %v1782_v30, 0.0 }
 0x1e7   : > { %v1736_v51 = vadd.f32 %v1735_v19, %v1734_v17  ;;  %v1837_v38 = vadd.f32 %v1836_v25, %v1835_v60 }
 0x1e8   : > { %v1586_v0 = vpop.f32.mrf.mxu3 }
 0x1e9   : > { %v1738_v34 = vadd.f32 %v1737_v20, %v1736_v51  ;;  %v1839_v42 = vadd.f32 %v1838_v39, %v1837_v38  ;;  %v1621_v35 = vadd.f32 %v1586_v0, %v1455_v16 }
 0x1eb   : > { %v1841_v26 = vadd.f32 %v1840_v18, %v1839_v42  ;;  %v1740_v46 = vadd.f32 %v1739_v44, %v1738_v34  ;;  %v1653_v7 = vpack.c.bf16 %v1621_v35, %v1621_v35  ;;  %v1789_v56 = vmul.f32 %v1621_v35, %v1621_v35 }
 0x1ec   : > { %v1747_v41 = vsel %vm1097_vm3, %v1621_v35, 0.0 }
 0x1ed   : > { %v1742_v57 = vadd.f32 %v1741_v43, %v1740_v46  ;;  %v1843_v33 = vadd.f32 %v1842_v63, %v1841_v26  ;;  %1686 = vst.msk [vmem:[%s3208_s16 + $0x78] sm:$0xf] %vm1655_vm6, %v1653_v7  ;;  %v1850_v2 = vsel %vm1097_vm3, %v1789_v56, 0.0 }
 0x1ef   : > { %v1744_v3 = vadd.f32 %v1743_v62, %v1742_v57  ;;  %v1845_v8 = vadd.f32 %v1844_v22, %v1843_v33 }
 0x1f0   : > { %v1588_v40 = vpop.f32.mrf.mxu3 }
 0x1f1   : > { %v1746_v32 = vadd.f32 %v1745_v9, %v1744_v3  ;;  %v1847_v14 = vadd.f32 %v1846_v13, %v1845_v8  ;;  %v1622_v53 = vadd.f32 %v1588_v40, %v1457_v23 }
 0x1f3   : > { %v1849_v52 = vadd.f32 %v1848_v49, %v1847_v14  ;;  %v1748_v54 = vadd.f32 %v1747_v41, %v1746_v32  ;;  %v1654_v4 = vpack.c.bf16 %v1622_v53, %v1622_v53  ;;  %v1749_v48 = vsel %vm1097_vm3, %v1622_v53, 0.0 }
 0x1f4   : > { %v1790_v12 = vmul.f32 %v1622_v53, %v1622_v53 }
 0x1f5   : > { %v1851_v55 = vadd.f32 %v1850_v2, %v1849_v52  ;;  %1687 = vst.msk [vmem:[%s3208_s16 + $0x7c] sm:$0xf] %vm1655_vm6, %v1654_v4  ;;  %v1750_v27 = vadd.f32 %v1749_v48, %v1748_v54  ;;  %s2440_s16 = sshra.s32 %s1894_s14, 4  ;;  %s2441_s16 = int_to_ptr.hbm [resolvable:$true] %s2440_s16 }
 0x1f6   : > { %v1852_v24 = vsel %vm1097_vm3, %v1790_v12, 0.0  ;;  %s2442_s17 = scalar_lea.hbm %s2441_s16, 1  ;;  %p2447_p1 = scmp.lt.s32.totalorder %s2441_s16, %s3596_s5 }
 0x1f7   : > { %v1751_v15 = vrot.slane %v1750_v27, 4  ;;  %v1853_v6 = vadd.f32 %v1852_v24, %v1851_v55  ;;  %p2443_p12 = scmp.ne.s32.totalorder %s2441_s16, %s2442_s17  ;;  %p2448_p2 = scmp.lt.s32.totalorder %s2446_s28, %s2442_s17 }
 0x1f9   : > { %v1752_v59 = vadd.f32 %v1751_v15, %v1750_v27  ;;  %v1854_v5 = vrot.slane %v1853_v6, 4  ;;  %p2444_p13 = pnand %p2443_p12, %p2615_p4  ;;  %p2449_p3 = por %p2448_p2, %p2447_p1 }
 0x1fb   : > { %v1753_v61 = vrot.slane %v1752_v59, 2  ;;  %v1855_v37 = vadd.f32 %v1854_v5, %v1853_v6  ;;  %p2445_p0 = pneg %p2444_p13 }
 0x1fd   : > { %v1754_v50 = vadd.f32 %v1753_v61, %v1752_v59  ;;  %v1856_v36 = vrot.slane %v1855_v37, 2  ;;  %p2450_p5 = pnand %p2449_p3, %p2445_p0 }
 0x1ff   : > { %v1755_v10 = vrot.slane %v1754_v50, 1  ;;  %v1857_v47 = vadd.f32 %v1856_v36, %v1855_v37 }
 0x201   : > { %v1756_v28 = vadd.f32 %v1755_v10, %v1754_v50  ;;  %v1858_v29 = vrot.slane %v1857_v47, 1 }
 0x203   : > { %1758 = vst.msk [vmem:[%s380_s8] sm:$0x1] %vm1757_vm7, %v1756_v28  ;;  %v1859_v11 = vadd.f32 %v1858_v29, %v1857_v47 }
 0x204   : > { %2453 = shalt.err (!%p2450_p5)
}
 0x205   : > { %2184 = dma.vmem_to_hbm [thread:$0]  (%p2615_p4), %s1892_s13, 16, %s1894_s14, %s1872_s24   ;;  %1860 = vst.msk [vmem:[%s386_s12] sm:$0x1] %vm1757_vm7, %v1859_v11 }
 0x206   : > { %s1876_s8 = scalar_lea.sflag [#allocation5], %s3515_s11  ;;  %s2468_s18 = sshra.s32 %s1908_s20, 4  ;;  %s2469_s18 = int_to_ptr.hbm [resolvable:$true] %s2468_s18 }
 0x207   : > { %s2470_s27 = scalar_lea.hbm %s2469_s18, 1  ;;  %s2474_s28 = scalar_lea.hbm %s3597_s6, 2 }
 0x208   : > { %p2471_p6 = scmp.ne.s32.totalorder %s2469_s18, %s2470_s27  ;;  %p2475_p10 = scmp.lt.s32.totalorder %s2469_s18, %s3597_s6 }
 0x209   : > { %p2476_p11 = scmp.lt.s32.totalorder %s2474_s28, %s2470_s27 }
 0x20a   : > { %p2472_p7 = pnand %p2471_p6, %p2615_p4 }
 0x20b   : > { %p2477_p12 = por %p2476_p11, %p2475_p10 }
 0x20c   : > { %p2473_p9 = pneg %p2472_p7 }
 0x20e   : > { %p2478_p13 = pnand %p2477_p12, %p2473_p9 }
 0x210   : > { %2481 = shalt.err (!%p2478_p13)
}
 0x211   : > { %2185 = dma.vmem_to_hbm [thread:$0]  (%p2615_p4), %s1906_s19, 16, %s1908_s20, %s1876_s8  }
 0x212 PF: > { %p2195_p0 = scmp.ge.s32.totalorder %s2536_s26, 2  ;;  %s1932_s11 = sand.u32 1, %s2516_s21  }
 0x213   : > { %s1933_s13 = scalar_lea.sflag [#allocation3], %s1932_s11 }
 0x214   : > { %p2189_p1 = pnand %p2195_p0, %p2622_p8 }
 0x216   : > { %p2190_p2 = pneg %p2189_p1 }
 0x218   : > { %2507 = dma.done.wait (%p2190_p2), %s1933_s13, 16  }
 0x219   : > { %2509 = vsyncadd (%p2190_p2), %s1933_s13, 4294967280  ;;  %s1942_s14 = scalar_lea.sflag [#allocation5], %s1932_s11 }
 0x21a   : > { %2511 = dma.done.wait (%p2190_p2), %s1942_s14, 16  }
 0x21b   : > { %2513 = vsyncadd (%p2190_p2), %s1942_s14, 4294967280  ;;  %s23_s26 = sadd.s32 1, %s2536_s26   ;;  %s3600_s21 = smov %s2520_s22 }
 0x21c   : > { %p20_p3 = scmp.ge.s32.totalorder %s23_s26, 4   ;;  %s3601_s22 = smov %s2524_s23 }
 0x21d   : > { %s3602_s23 = smov %s2628_s10  ;;  %s3603_s24 = smov %s2532_s25 }
 0x21e   : > { %s3604_s25 = smov %s3606_s29  ;;  %22 = sbr.rel (!%p20_p3) target bundleno = 6 (0x6), region = 108 }
 0x223   :  { %1947 = vsyncpa [#allocation3], 1 }
 0x224   :  { %1949 = vsyncpa [#allocation3 + $0x1], 1 }
 0x225   :  { %1950 = vsyncpa [#allocation5], 1 }
 0x226   :  { %1952 = vsyncpa [#allocation5 + $0x1], 1 }

</bundles_post_ra>
